<compile_context>
chip_gen: v5e
topology: v5e:2x2
jax: 0.10.0
libtpu: 0.0.40
codegen_flags: <defaults>
</compile_context>

<pallas_src>
import jax
import jax.numpy as jnp
from jax.experimental import pallas as pl
from jax.experimental.pallas import tpu as pltpu

T_IN = 20      # input sequence length (forced by lstm_input_size = 18 * 64)
T_CONV = 18    # length after valid Conv1d(kernel=3)
C_IN = 4       # input_size
C1 = 32        # conv1d_out_channels
C2 = 64        # conv2d_out_channels
H = 32         # hidden_layer_size
NL = 2         # num_layers
OUT = 4        # output_size
TB_MAX = 256   # batch rows per grid step (VMEM-safe ceiling on v7x's 64 MiB)
SUB = 16       # bf16 sublane tile; tb multiple of 16 keeps all row-block slices aligned


def _round_up(n, m):
    return ((n + m - 1) // m) * m


def dnn_kernel(x_ref, w1_ref, b1_ref, w2_ref, b2_ref, wlin_ref, blin_ref,
               wg1_ref, bg1_ref, wg2_ref, bg2_ref, wd_ref, bd_ref, out_ref):
    f32, bf16 = jnp.float32, jnp.bfloat16
    xt = x_ref[0]                                    # [20*tb, 4] bf16, rows ordered (t, b)
    tb = xt.shape[0] // T_IN                         # static block batch size

    # ---- Conv1d(4 -> 32, k=3, valid) + ReLU --------------------------------------------
    # Time is the major row factor, so each kernel tap is a sublane-aligned row-block
    # shift of x; three tiny K=4 bf16 dots accumulated in f32.
    y1 = jnp.dot(xt[0:T_CONV * tb, :], w1_ref[0], preferred_element_type=f32)
    y1 = y1 + jnp.dot(xt[tb:(T_CONV + 1) * tb, :], w1_ref[1], preferred_element_type=f32)
    y1 = y1 + jnp.dot(xt[2 * tb:(T_CONV + 2) * tb, :], w1_ref[2], preferred_element_type=f32)
    y1 = jnp.maximum(y1 + b1_ref[...], 0.0)          # [18*tb, 32] f32
    y1b = y1.astype(bf16)

    # ---- Conv2d(32 -> 64, k=(3,1), pad=(1,0)) + ReLU -----------------------------------
    # Per-tap matmuls; the +/-1 time taps become row-block shifts of the tap products
    # (zero blocks at the padded boundaries) -> no lane-offset concatenation, no XLU work.
    z2 = jnp.zeros((tb, C2), f32)
    p_mid = jnp.dot(y1b, w2_ref[1], preferred_element_type=f32)                    # w[1]*y1[t]
    p_lo = jnp.dot(y1b[:(T_CONV - 1) * tb, :], w2_ref[0], preferred_element_type=f32)
    p_hi = jnp.dot(y1b[tb:, :], w2_ref[2], preferred_element_type=f32)
    y2 = (p_mid
          + jnp.concatenate([z2, p_lo], axis=0)      # w[0] * y1[t-1]
          + jnp.concatenate([p_hi, z2], axis=0)      # w[2] * y1[t+1]
          + b2_ref[...])
    y2 = jnp.maximum(y2, 0.0)                        # [18*tb, 64] f32
    y2b = y2.astype(bf16)

    # ---- Linear(1152 -> 32) + ReLU: 18 accumulated [tb,64]@[64,32] dots -----------------
    # Avoids assembling a [tb,1152] lane-concat; each time block is a sublane-aligned slice.
    hacc = jnp.zeros((tb, H), f32)
    for t in range(T_CONV):
        hacc = hacc + jnp.dot(y2b[t * tb:(t + 1) * tb, :], wlin_ref[t],
                              preferred_element_type=f32)
    h = jnp.maximum(hacc + blin_ref[...], 0.0)       # [tb, 32] f32

    # ---- 2-layer LSTM over a length-1 sequence, h0 = c0 = 0 ----------------------------
    # Forget gate omitted because f * c0 == 0 exactly (valid ONLY for seq_len == 1).
    # One tiny dot per gate: no zero-padded gate lanes, no lane-offset slicing.
    def lstm_cell(xin, wg_ref, bg_ref):
        xb = xin.astype(bf16)
        i = jax.nn.sigmoid(jnp.dot(xb, wg_ref[0], preferred_element_type=f32) + bg_ref[0])
        g = jnp.tanh(jnp.dot(xb, wg_ref[1], preferred_element_type=f32) + bg_ref[1])
        o = jax.nn.sigmoid(jnp.dot(xb, wg_ref[2], preferred_element_type=f32) + bg_ref[2])
        return o * jnp.tanh(i * g)                   # [tb, 32] f32

    h1 = lstm_cell(h, wg1_ref, bg1_ref)              # layer-0 final hidden
    h2 = lstm_cell(h1, wg2_ref, bg2_ref)             # layer-1 final hidden

    # TODO(synk): nn.Dropout is identity at inference; train-mode random mask not implemented.
    # ---- dense(64 -> 4) on concat([h1, h2]) ---------------------------------------------
    hcat = jnp.concatenate([h1, h2], axis=-1).astype(bf16)   # [tb, 64]
    out_ref[0] = jnp.dot(hcat, wd_ref[...], preferred_element_type=f32) + bd_ref[...]


def _prep_params(p):
    """Rearrange PyTorch-convention parameters into MXU-friendly bf16 layouts."""
    f32, bf16 = jnp.float32, jnp.bfloat16
    # conv1 per-tap weights: w1[k, c, o] = conv1_w[o, c, k].
    w1 = jnp.transpose(p["conv1_w"], (2, 1, 0)).astype(bf16)                 # [3, 4, 32]
    b1 = p["conv1_b"].reshape(1, C1).astype(f32)
    # conv2 per-tap weights (width dim is 1): w2[k, c, o] = conv2_w[o, c, k, 0].
    w2 = jnp.transpose(p["conv2_w"][:, :, :, 0], (2, 1, 0)).astype(bf16)     # [3, 32, 64]
    b2 = p["conv2_b"].reshape(1, C2).astype(f32)
    # linear over torch channel-major flatten: wlin[t, c, j] = lin1_w[j, c*18 + t].
    wlin = jnp.transpose(p["lin1_w"].reshape(H, C2, T_CONV),
                         (2, 1, 0)).astype(bf16)                             # [18, 64, 32]
    blin = p["lin1_b"].reshape(1, H).astype(f32)

    def gate_pack(wih, bih, bhh):
        # torch gate order along weight_ih rows: i, f, g, o.  The forget gate is dropped
        # (seq_len == 1 and c0 == 0 => f * c0 == 0); weight_hh is unused (h0 == 0).
        gates = (0, 2, 3)                            # i, g, o
        w = jnp.stack([wih[g * H:(g + 1) * H, :].T for g in gates], axis=0)  # [3, 32, 32]
        b = jnp.stack([(bih + bhh)[g * H:(g + 1) * H].reshape(1, H)
                       for g in gates], axis=0)                              # [3, 1, 32]
        return w.astype(bf16), b.astype(f32)

    wg1, bg1 = gate_pack(p["lstm_wih0"], p["lstm_bih0"], p["lstm_bhh0"])
    wg2, bg2 = gate_pack(p["lstm_wih1"], p["lstm_bih1"], p["lstm_bhh1"])

    wd = p["dense_w"].T.astype(bf16)                 # [64, 4]
    bd = p["dense_b"].reshape(1, OUT).astype(f32)
    return (w1, b1, w2, b2, wlin, blin, wg1, bg1, wg2, bg2, wd, bd)


def _const_spec(a):
    n = a.ndim
    return pl.BlockSpec(a.shape, lambda g, _n=n: (0,) * _n)


def dnn_forward(x, p):
    B = x.shape[0]
    # Fit the block size to B: nblk blocks of tb rows, tb a multiple of the bf16 sublane
    # tile.  Force >= 2 blocks whenever B allows so v7x's two TensorCores both get work.
    nblk = pl.cdiv(B, TB_MAX)
    if B > SUB:
        nblk = max(nblk, 2)
    tb = _round_up(pl.cdiv(B, nblk), SUB)
    nblk = pl.cdiv(B, tb)
    b_pad = nblk * tb

    xp = x if b_pad == B else jnp.pad(x, ((0, b_pad - B), (0, 0), (0, 0)))
    # Time-major rows within each block (row = t*tb + b_local), emitted in bf16; the
    # conv im2col taps are built in-kernel as sublane-aligned row-block shifts.
    xt = (xp.reshape(nblk, tb, T_IN, C_IN)
            .transpose(0, 2, 1, 3)
            .reshape(nblk, T_IN * tb, C_IN)
            .astype(jnp.bfloat16))

    weights = _prep_params(p)

    out = pl.pallas_call(
        dnn_kernel,
        out_shape=jax.ShapeDtypeStruct((nblk, tb, OUT), jnp.float32),
        grid=(nblk,),
        in_specs=[pl.BlockSpec((1, T_IN * tb, C_IN), lambda g: (g, 0, 0))]
                 + [_const_spec(w) for w in weights],
        out_specs=pl.BlockSpec((1, tb, OUT), lambda g: (g, 0, 0)),
        compiler_params=pltpu.CompilerParams(
            dimension_semantics=("parallel",),
            vmem_limit_bytes=40 << 20),   # > peak need (~11 MB @ tb=256), < v7x 64 MiB phys
    )(xt, *weights)
    return out.reshape(b_pad, OUT)[:B]


def init_params(key):
    """Deterministic synthetic parameters with PyTorch weight-shape conventions."""
    ks = jax.random.split(key, 6)

    def nrm(k, shape, std):
        return std * jax.random.normal(k, shape, jnp.float32)

    p = {}
    p["conv1_w"] = nrm(ks[0], (C1, C_IN, 3), (1.0 / (C_IN * 3)) ** 0.5)
    p["conv1_b"] = jnp.full((C1,), 0.01, jnp.float32)
    p["conv2_w"] = nrm(ks[1], (C2, C1, 3, 1), (1.0 / (C1 * 3)) ** 0.5)
    p["conv2_b"] = jnp.full((C2,), 0.01, jnp.float32)
    p["lin1_w"] = nrm(ks[2], (H, T_CONV * C2), (1.0 / (T_CONV * C2)) ** 0.5)
    p["lin1_b"] = jnp.full((H,), 0.01, jnp.float32)
    # LSTM init per DNN_Net.init_weights: weight_ih kaiming-normal, biases zero.
    # weight_hh (orthogonal in torch) is mathematically unused here (seq_len=1, h0=0).
    p["lstm_wih0"] = nrm(ks[3], (4 * H, H), (2.0 / H) ** 0.5)
    p["lstm_wih1"] = nrm(ks[4], (4 * H, H), (2.0 / H) ** 0.5)
    for l in range(NL):
        p[f"lstm_bih{l}"] = jnp.zeros((4 * H,), jnp.float32)
        p[f"lstm_bhh{l}"] = jnp.zeros((4 * H,), jnp.float32)
    p["dense_w"] = nrm(ks[5], (OUT, NL * H), (1.0 / (NL * H)) ** 0.5)
    p["dense_b"] = jnp.full((OUT,), 0.01, jnp.float32)
    return p


def reference_forward(x, p):
    """Pure-JAX mirror of the PyTorch forward (eval mode), using torch-layout weights."""
    HP = jax.lax.Precision.HIGHEST
    B = x.shape[0]
    xt = jnp.transpose(x, (0, 2, 1))                               # [B, 4, 20] (NCW)
    y1 = jnp.stack(
        [jnp.einsum("bck,ock->bo", xt[:, :, t:t + 3], p["conv1_w"], precision=HP)
         for t in range(T_CONV)], axis=-1) + p["conv1_b"][None, :, None]
    y1 = jnp.maximum(y1, 0.0)                                      # [B, 32, 18]
    y1p = jnp.pad(y1, ((0, 0), (0, 0), (1, 1)))                    # [B, 32, 20]
    w2 = p["conv2_w"][:, :, :, 0]
    y2 = jnp.stack(
        [jnp.einsum("bck,ock->bo", y1p[:, :, t:t + 3], w2, precision=HP)
         for t in range(T_CONV)], axis=-1) + p["conv2_b"][None, :, None]
    y2 = jnp.maximum(y2, 0.0)                                      # [B, 64, 18]
    flat = y2.reshape(B, -1)                                       # torch .view(B, -1)
    h = jnp.maximum(jnp.dot(flat, p["lin1_w"].T, precision=HP) + p["lin1_b"], 0.0)

    def cell(xin, wih, bih, bhh):
        gates = jnp.dot(xin, wih.T, precision=HP) + bih + bhh      # h0 = 0
        i = jax.nn.sigmoid(gates[:, 0:H])
        g = jnp.tanh(gates[:, 2 * H:3 * H])
        o = jax.nn.sigmoid(gates[:, 3 * H:4 * H])
        return o * jnp.tanh(i * g)                                 # c0 = 0

    h1 = cell(h, p["lstm_wih0"], p["lstm_bih0"], p["lstm_bhh0"])
    h2 = cell(h1, p["lstm_wih1"], p["lstm_bih1"], p["lstm_bhh1"])
    hn = jnp.concatenate([h1, h2], axis=-1)                        # [B, 64]
    return jnp.dot(hn, p["dense_w"].T, precision=HP) + p["dense_b"]


if __name__ == "__main__":
    key = jax.random.PRNGKey(0)
    kx, kp = jax.random.split(key)
    params = init_params(kp)

    # Small smoke test (single block of 16 padded rows).
    x_small = jax.random.normal(kx, (2, T_IN, C_IN), jnp.float32)
    out_small = jax.block_until_ready(dnn_forward(x_small, params))
    ref_small = jax.block_until_ready(reference_forward(x_small, params))
    assert out_small.shape == (2, OUT)
    err_small = float(jnp.max(jnp.abs(out_small - ref_small)))

    # Multi-block test exercising tb fitted to B (2 blocks of 160 rows) and batch padding.
    x_big = jax.random.normal(jax.random.fold_in(kx, 1), (300, T_IN, C_IN), jnp.float32)
    out_big = jax.block_until_ready(dnn_forward(x_big, params))
    ref_big = jax.block_until_ready(reference_forward(x_big, params))
    assert out_big.shape == (300, OUT)
    err_big = float(jnp.max(jnp.abs(out_big - ref_big)))

    # bf16 matmul inputs with f32 accumulation: observed error is ~1e-3 scale vs the
    # f32-HIGHEST reference; 2.5e-2 gives headroom while still catching structural bugs.
    if max(err_small, err_big) > 2.5e-2:
        raise AssertionError(
            f"Pallas output mismatch vs reference: max abs err {err_small:.3e} / {err_big:.3e}")
    print("KERNEL_OK")
</pallas_src>

<mosaic_0001>
module attributes {stable_mosaic.version = 11 : i64} {
  func.func @dnn_kernel(%arg0: i32, %arg1: memref<1x320x4xbf16, #tpu.memory_space<vmem>>, %arg2: memref<3x4x32xbf16, #tpu.memory_space<vmem>>, %arg3: memref<1x32xf32, #tpu.memory_space<vmem>>, %arg4: memref<3x32x64xbf16, #tpu.memory_space<vmem>>, %arg5: memref<1x64xf32, #tpu.memory_space<vmem>>, %arg6: memref<18x64x32xbf16, #tpu.memory_space<vmem>>, %arg7: memref<1x32xf32, #tpu.memory_space<vmem>>, %arg8: memref<3x32x32xbf16, #tpu.memory_space<vmem>>, %arg9: memref<3x1x32xf32, #tpu.memory_space<vmem>>, %arg10: memref<3x32x32xbf16, #tpu.memory_space<vmem>>, %arg11: memref<3x1x32xf32, #tpu.memory_space<vmem>>, %arg12: memref<64x4xbf16, #tpu.memory_space<vmem>>, %arg13: memref<1x4xf32, #tpu.memory_space<vmem>>, %arg14: memref<1x16x4xf32, #tpu.memory_space<vmem>>) attributes {dimension_semantics = [#tpu.dimension_semantics<parallel>], iteration_bounds = array<i64: 1>, scalar_prefetch = 0 : i64, scratch_operands = 0 : i64, tpu.core_type = #tpu.core_type<tc>, window_params = [{transform_indices = @transform_0, window_bounds = array<i64: 1, 320, 4>}, {pipeline_mode = #tpu.pipeline_mode<synchronous>, transform_indices = @transform_1, window_bounds = array<i64: 3, 4, 32>}, {pipeline_mode = #tpu.pipeline_mode<synchronous>, transform_indices = @transform_2, window_bounds = array<i64: 1, 32>}, {pipeline_mode = #tpu.pipeline_mode<synchronous>, transform_indices = @transform_3, window_bounds = array<i64: 3, 32, 64>}, {pipeline_mode = #tpu.pipeline_mode<synchronous>, transform_indices = @transform_4, window_bounds = array<i64: 1, 64>}, {pipeline_mode = #tpu.pipeline_mode<synchronous>, transform_indices = @transform_5, window_bounds = array<i64: 18, 64, 32>}, {pipeline_mode = #tpu.pipeline_mode<synchronous>, transform_indices = @transform_6, window_bounds = array<i64: 1, 32>}, {pipeline_mode = #tpu.pipeline_mode<synchronous>, transform_indices = @transform_7, window_bounds = array<i64: 3, 32, 32>}, {pipeline_mode = #tpu.pipeline_mode<synchronous>, transform_indices = @transform_8, window_bounds = array<i64: 3, 1, 32>}, {pipeline_mode = #tpu.pipeline_mode<synchronous>, transform_indices = @transform_9, window_bounds = array<i64: 3, 32, 32>}, {pipeline_mode = #tpu.pipeline_mode<synchronous>, transform_indices = @transform_10, window_bounds = array<i64: 3, 1, 32>}, {pipeline_mode = #tpu.pipeline_mode<synchronous>, transform_indices = @transform_11, window_bounds = array<i64: 64, 4>}, {pipeline_mode = #tpu.pipeline_mode<synchronous>, transform_indices = @transform_12, window_bounds = array<i64: 1, 4>}, {transform_indices = @transform_13, window_bounds = array<i64: 1, 16, 4>}]} {
    %c0 = arith.constant 0 : index
    %c0_0 = arith.constant 0 : index
    %c0_1 = arith.constant 0 : index
    %0 = vector.load %arg1[%c0, %c0_0, %c0_1] : memref<1x320x4xbf16, #tpu.memory_space<vmem>>, vector<1x320x4xbf16>
    %1 = vector.shape_cast %0 : vector<1x320x4xbf16> to vector<320x4xbf16>
    %2 = vector.extract_strided_slice %1 {offsets = [0, 0], sizes = [288, 4], strides = [1, 1]} : vector<320x4xbf16> to vector<288x4xbf16>
    %c0_2 = arith.constant 0 : index
    %c0_3 = arith.constant 0 : index
    %c0_4 = arith.constant 0 : index
    %3 = vector.load %arg2[%c0_2, %c0_3, %c0_4] : memref<3x4x32xbf16, #tpu.memory_space<vmem>>, vector<1x4x32xbf16>
    %4 = vector.shape_cast %3 : vector<1x4x32xbf16> to vector<4x32xbf16>
    %cst = arith.constant dense<0.000000e+00> : vector<288x32xf32>
    %5 = tpu.matmul %2, %4, %cst {dimension_numbers = #tpu.dot_dimension_numbers<[1], [0], [0], [1], [0, 0, 1, 1], [], []>} : vector<288x4xbf16>, vector<4x32xbf16>, vector<288x32xf32> -> vector<288x32xf32>
    %6 = vector.extract_strided_slice %1 {offsets = [16, 0], sizes = [288, 4], strides = [1, 1]} : vector<320x4xbf16> to vector<288x4xbf16>
    %c1 = arith.constant 1 : index
    %c0_5 = arith.constant 0 : index
    %c0_6 = arith.constant 0 : index
    %7 = vector.load %arg2[%c1, %c0_5, %c0_6] : memref<3x4x32xbf16, #tpu.memory_space<vmem>>, vector<1x4x32xbf16>
    %8 = vector.shape_cast %7 : vector<1x4x32xbf16> to vector<4x32xbf16>
    %cst_7 = arith.constant dense<0.000000e+00> : vector<288x32xf32>
    %9 = tpu.matmul %6, %8, %cst_7 {dimension_numbers = #tpu.dot_dimension_numbers<[1], [0], [0], [1], [0, 0, 1, 1], [], []>} : vector<288x4xbf16>, vector<4x32xbf16>, vector<288x32xf32> -> vector<288x32xf32>
    %10 = arith.addf %5, %9 : vector<288x32xf32>
    %11 = vector.extract_strided_slice %1 {offsets = [32, 0], sizes = [288, 4], strides = [1, 1]} : vector<320x4xbf16> to vector<288x4xbf16>
    %c2 = arith.constant 2 : index
    %c0_8 = arith.constant 0 : index
    %c0_9 = arith.constant 0 : index
    %12 = vector.load %arg2[%c2, %c0_8, %c0_9] : memref<3x4x32xbf16, #tpu.memory_space<vmem>>, vector<1x4x32xbf16>
    %13 = vector.shape_cast %12 : vector<1x4x32xbf16> to vector<4x32xbf16>
    %cst_10 = arith.constant dense<0.000000e+00> : vector<288x32xf32>
    %14 = tpu.matmul %11, %13, %cst_10 {dimension_numbers = #tpu.dot_dimension_numbers<[1], [0], [0], [1], [0, 0, 1, 1], [], []>} : vector<288x4xbf16>, vector<4x32xbf16>, vector<288x32xf32> -> vector<288x32xf32>
    %15 = arith.addf %10, %14 : vector<288x32xf32>
    %c0_11 = arith.constant 0 : index
    %c0_12 = arith.constant 0 : index
    %16 = vector.load %arg3[%c0_11, %c0_12] : memref<1x32xf32, #tpu.memory_space<vmem>>, vector<1x32xf32>
    %17 = vector.broadcast %16 : vector<1x32xf32> to vector<288x32xf32>
    %18 = arith.addf %15, %17 : vector<288x32xf32>
    %cst_13 = arith.constant 0.000000e+00 : f32
    %19 = vector.broadcast %cst_13 : f32 to vector<288x32xf32>
    %20 = arith.maximumf %18, %19 : vector<288x32xf32>
    %21 = arith.truncf %20 : vector<288x32xf32> to vector<288x32xbf16>
    %cst_14 = arith.constant 0.000000e+00 : f32
    %22 = vector.broadcast %cst_14 : f32 to vector<16x64xf32>
    %c1_15 = arith.constant 1 : index
    %c0_16 = arith.constant 0 : index
    %c0_17 = arith.constant 0 : index
    %23 = vector.load %arg4[%c1_15, %c0_16, %c0_17] : memref<3x32x64xbf16, #tpu.memory_space<vmem>>, vector<1x32x64xbf16>
    %24 = vector.shape_cast %23 : vector<1x32x64xbf16> to vector<32x64xbf16>
    %cst_18 = arith.constant dense<0.000000e+00> : vector<288x64xf32>
    %25 = tpu.matmul %21, %24, %cst_18 {dimension_numbers = #tpu.dot_dimension_numbers<[1], [0], [0], [1], [0, 0, 1, 1], [], []>} : vector<288x32xbf16>, vector<32x64xbf16>, vector<288x64xf32> -> vector<288x64xf32>
    %26 = vector.extract_strided_slice %21 {offsets = [0, 0], sizes = [272, 32], strides = [1, 1]} : vector<288x32xbf16> to vector<272x32xbf16>
    %c0_19 = arith.constant 0 : index
    %c0_20 = arith.constant 0 : index
    %c0_21 = arith.constant 0 : index
    %27 = vector.load %arg4[%c0_19, %c0_20, %c0_21] : memref<3x32x64xbf16, #tpu.memory_space<vmem>>, vector<1x32x64xbf16>
    %28 = vector.shape_cast %27 : vector<1x32x64xbf16> to vector<32x64xbf16>
    %cst_22 = arith.constant dense<0.000000e+00> : vector<272x64xf32>
    %29 = tpu.matmul %26, %28, %cst_22 {dimension_numbers = #tpu.dot_dimension_numbers<[1], [0], [0], [1], [0, 0, 1, 1], [], []>} : vector<272x32xbf16>, vector<32x64xbf16>, vector<272x64xf32> -> vector<272x64xf32>
    %30 = vector.extract_strided_slice %21 {offsets = [16, 0], sizes = [272, 32], strides = [1, 1]} : vector<288x32xbf16> to vector<272x32xbf16>
    %c2_23 = arith.constant 2 : index
    %c0_24 = arith.constant 0 : index
    %c0_25 = arith.constant 0 : index
    %31 = vector.load %arg4[%c2_23, %c0_24, %c0_25] : memref<3x32x64xbf16, #tpu.memory_space<vmem>>, vector<1x32x64xbf16>
    %32 = vector.shape_cast %31 : vector<1x32x64xbf16> to vector<32x64xbf16>
    %cst_26 = arith.constant dense<0.000000e+00> : vector<272x64xf32>
    %33 = tpu.matmul %30, %32, %cst_26 {dimension_numbers = #tpu.dot_dimension_numbers<[1], [0], [0], [1], [0, 0, 1, 1], [], []>} : vector<272x32xbf16>, vector<32x64xbf16>, vector<272x64xf32> -> vector<272x64xf32>
    %34 = tpu.concatenate %22, %29 in 0 : vector<16x64xf32>, vector<272x64xf32> -> vector<288x64xf32>
    %35 = arith.addf %25, %34 : vector<288x64xf32>
    %36 = tpu.concatenate %33, %22 in 0 : vector<272x64xf32>, vector<16x64xf32> -> vector<288x64xf32>
    %37 = arith.addf %35, %36 : vector<288x64xf32>
    %c0_27 = arith.constant 0 : index
    %c0_28 = arith.constant 0 : index
    %38 = vector.load %arg5[%c0_27, %c0_28] : memref<1x64xf32, #tpu.memory_space<vmem>>, vector<1x64xf32>
    %39 = vector.broadcast %38 : vector<1x64xf32> to vector<288x64xf32>
    %40 = arith.addf %37, %39 : vector<288x64xf32>
    %cst_29 = arith.constant 0.000000e+00 : f32
    %41 = vector.broadcast %cst_29 : f32 to vector<288x64xf32>
    %42 = arith.maximumf %40, %41 : vector<288x64xf32>
    %43 = arith.truncf %42 : vector<288x64xf32> to vector<288x64xbf16>
    %cst_30 = arith.constant 0.000000e+00 : f32
    %44 = vector.broadcast %cst_30 : f32 to vector<16x32xf32>
    %45 = vector.extract_strided_slice %43 {offsets = [0, 0], sizes = [16, 64], strides = [1, 1]} : vector<288x64xbf16> to vector<16x64xbf16>
    %c0_31 = arith.constant 0 : index
    %c0_32 = arith.constant 0 : index
    %c0_33 = arith.constant 0 : index
    %46 = vector.load %arg6[%c0_31, %c0_32, %c0_33] : memref<18x64x32xbf16, #tpu.memory_space<vmem>>, vector<1x64x32xbf16>
    %47 = vector.shape_cast %46 : vector<1x64x32xbf16> to vector<64x32xbf16>
    %cst_34 = arith.constant dense<0.000000e+00> : vector<16x32xf32>
    %48 = tpu.matmul %45, %47, %cst_34 {dimension_numbers = #tpu.dot_dimension_numbers<[1], [0], [0], [1], [0, 0, 1, 1], [], []>} : vector<16x64xbf16>, vector<64x32xbf16>, vector<16x32xf32> -> vector<16x32xf32>
    %49 = arith.addf %44, %48 : vector<16x32xf32>
    %50 = vector.extract_strided_slice %43 {offsets = [16, 0], sizes = [16, 64], strides = [1, 1]} : vector<288x64xbf16> to vector<16x64xbf16>
    %c1_35 = arith.constant 1 : index
    %c0_36 = arith.constant 0 : index
    %c0_37 = arith.constant 0 : index
    %51 = vector.load %arg6[%c1_35, %c0_36, %c0_37] : memref<18x64x32xbf16, #tpu.memory_space<vmem>>, vector<1x64x32xbf16>
    %52 = vector.shape_cast %51 : vector<1x64x32xbf16> to vector<64x32xbf16>
    %cst_38 = arith.constant dense<0.000000e+00> : vector<16x32xf32>
    %53 = tpu.matmul %50, %52, %cst_38 {dimension_numbers = #tpu.dot_dimension_numbers<[1], [0], [0], [1], [0, 0, 1, 1], [], []>} : vector<16x64xbf16>, vector<64x32xbf16>, vector<16x32xf32> -> vector<16x32xf32>
    %54 = arith.addf %49, %53 : vector<16x32xf32>
    %55 = vector.extract_strided_slice %43 {offsets = [32, 0], sizes = [16, 64], strides = [1, 1]} : vector<288x64xbf16> to vector<16x64xbf16>
    %c2_39 = arith.constant 2 : index
    %c0_40 = arith.constant 0 : index
    %c0_41 = arith.constant 0 : index
    %56 = vector.load %arg6[%c2_39, %c0_40, %c0_41] : memref<18x64x32xbf16, #tpu.memory_space<vmem>>, vector<1x64x32xbf16>
    %57 = vector.shape_cast %56 : vector<1x64x32xbf16> to vector<64x32xbf16>
    %cst_42 = arith.constant dense<0.000000e+00> : vector<16x32xf32>
    %58 = tpu.matmul %55, %57, %cst_42 {dimension_numbers = #tpu.dot_dimension_numbers<[1], [0], [0], [1], [0, 0, 1, 1], [], []>} : vector<16x64xbf16>, vector<64x32xbf16>, vector<16x32xf32> -> vector<16x32xf32>
    %59 = arith.addf %54, %58 : vector<16x32xf32>
    %60 = vector.extract_strided_slice %43 {offsets = [48, 0], sizes = [16, 64], strides = [1, 1]} : vector<288x64xbf16> to vector<16x64xbf16>
    %c3 = arith.constant 3 : index
    %c0_43 = arith.constant 0 : index
    %c0_44 = arith.constant 0 : index
    %61 = vector.load %arg6[%c3, %c0_43, %c0_44] : memref<18x64x32xbf16, #tpu.memory_space<vmem>>, vector<1x64x32xbf16>
    %62 = vector.shape_cast %61 : vector<1x64x32xbf16> to vector<64x32xbf16>
    %cst_45 = arith.constant dense<0.000000e+00> : vector<16x32xf32>
    %63 = tpu.matmul %60, %62, %cst_45 {dimension_numbers = #tpu.dot_dimension_numbers<[1], [0], [0], [1], [0, 0, 1, 1], [], []>} : vector<16x64xbf16>, vector<64x32xbf16>, vector<16x32xf32> -> vector<16x32xf32>
    %64 = arith.addf %59, %63 : vector<16x32xf32>
    %65 = vector.extract_strided_slice %43 {offsets = [64, 0], sizes = [16, 64], strides = [1, 1]} : vector<288x64xbf16> to vector<16x64xbf16>
    %c4 = arith.constant 4 : index
    %c0_46 = arith.constant 0 : index
    %c0_47 = arith.constant 0 : index
    %66 = vector.load %arg6[%c4, %c0_46, %c0_47] : memref<18x64x32xbf16, #tpu.memory_space<vmem>>, vector<1x64x32xbf16>
    %67 = vector.shape_cast %66 : vector<1x64x32xbf16> to vector<64x32xbf16>
    %cst_48 = arith.constant dense<0.000000e+00> : vector<16x32xf32>
    %68 = tpu.matmul %65, %67, %cst_48 {dimension_numbers = #tpu.dot_dimension_numbers<[1], [0], [0], [1], [0, 0, 1, 1], [], []>} : vector<16x64xbf16>, vector<64x32xbf16>, vector<16x32xf32> -> vector<16x32xf32>
    %69 = arith.addf %64, %68 : vector<16x32xf32>
    %70 = vector.extract_strided_slice %43 {offsets = [80, 0], sizes = [16, 64], strides = [1, 1]} : vector<288x64xbf16> to vector<16x64xbf16>
    %c5 = arith.constant 5 : index
    %c0_49 = arith.constant 0 : index
    %c0_50 = arith.constant 0 : index
    %71 = vector.load %arg6[%c5, %c0_49, %c0_50] : memref<18x64x32xbf16, #tpu.memory_space<vmem>>, vector<1x64x32xbf16>
    %72 = vector.shape_cast %71 : vector<1x64x32xbf16> to vector<64x32xbf16>
    %cst_51 = arith.constant dense<0.000000e+00> : vector<16x32xf32>
    %73 = tpu.matmul %70, %72, %cst_51 {dimension_numbers = #tpu.dot_dimension_numbers<[1], [0], [0], [1], [0, 0, 1, 1], [], []>} : vector<16x64xbf16>, vector<64x32xbf16>, vector<16x32xf32> -> vector<16x32xf32>
    %74 = arith.addf %69, %73 : vector<16x32xf32>
    %75 = vector.extract_strided_slice %43 {offsets = [96, 0], sizes = [16, 64], strides = [1, 1]} : vector<288x64xbf16> to vector<16x64xbf16>
    %c6 = arith.constant 6 : index
    %c0_52 = arith.constant 0 : index
    %c0_53 = arith.constant 0 : index
    %76 = vector.load %arg6[%c6, %c0_52, %c0_53] : memref<18x64x32xbf16, #tpu.memory_space<vmem>>, vector<1x64x32xbf16>
    %77 = vector.shape_cast %76 : vector<1x64x32xbf16> to vector<64x32xbf16>
    %cst_54 = arith.constant dense<0.000000e+00> : vector<16x32xf32>
    %78 = tpu.matmul %75, %77, %cst_54 {dimension_numbers = #tpu.dot_dimension_numbers<[1], [0], [0], [1], [0, 0, 1, 1], [], []>} : vector<16x64xbf16>, vector<64x32xbf16>, vector<16x32xf32> -> vector<16x32xf32>
    %79 = arith.addf %74, %78 : vector<16x32xf32>
    %80 = vector.extract_strided_slice %43 {offsets = [112, 0], sizes = [16, 64], strides = [1, 1]} : vector<288x64xbf16> to vector<16x64xbf16>
    %c7 = arith.constant 7 : index
    %c0_55 = arith.constant 0 : index
    %c0_56 = arith.constant 0 : index
    %81 = vector.load %arg6[%c7, %c0_55, %c0_56] : memref<18x64x32xbf16, #tpu.memory_space<vmem>>, vector<1x64x32xbf16>
    %82 = vector.shape_cast %81 : vector<1x64x32xbf16> to vector<64x32xbf16>
    %cst_57 = arith.constant dense<0.000000e+00> : vector<16x32xf32>
    %83 = tpu.matmul %80, %82, %cst_57 {dimension_numbers = #tpu.dot_dimension_numbers<[1], [0], [0], [1], [0, 0, 1, 1], [], []>} : vector<16x64xbf16>, vector<64x32xbf16>, vector<16x32xf32> -> vector<16x32xf32>
    %84 = arith.addf %79, %83 : vector<16x32xf32>
    %85 = vector.extract_strided_slice %43 {offsets = [128, 0], sizes = [16, 64], strides = [1, 1]} : vector<288x64xbf16> to vector<16x64xbf16>
    %c8 = arith.constant 8 : index
    %c0_58 = arith.constant 0 : index
    %c0_59 = arith.constant 0 : index
    %86 = vector.load %arg6[%c8, %c0_58, %c0_59] : memref<18x64x32xbf16, #tpu.memory_space<vmem>>, vector<1x64x32xbf16>
    %87 = vector.shape_cast %86 : vector<1x64x32xbf16> to vector<64x32xbf16>
    %cst_60 = arith.constant dense<0.000000e+00> : vector<16x32xf32>
    %88 = tpu.matmul %85, %87, %cst_60 {dimension_numbers = #tpu.dot_dimension_numbers<[1], [0], [0], [1], [0, 0, 1, 1], [], []>} : vector<16x64xbf16>, vector<64x32xbf16>, vector<16x32xf32> -> vector<16x32xf32>
    %89 = arith.addf %84, %88 : vector<16x32xf32>
    %90 = vector.extract_strided_slice %43 {offsets = [144, 0], sizes = [16, 64], strides = [1, 1]} : vector<288x64xbf16> to vector<16x64xbf16>
    %c9 = arith.constant 9 : index
    %c0_61 = arith.constant 0 : index
    %c0_62 = arith.constant 0 : index
    %91 = vector.load %arg6[%c9, %c0_61, %c0_62] : memref<18x64x32xbf16, #tpu.memory_space<vmem>>, vector<1x64x32xbf16>
    %92 = vector.shape_cast %91 : vector<1x64x32xbf16> to vector<64x32xbf16>
    %cst_63 = arith.constant dense<0.000000e+00> : vector<16x32xf32>
    %93 = tpu.matmul %90, %92, %cst_63 {dimension_numbers = #tpu.dot_dimension_numbers<[1], [0], [0], [1], [0, 0, 1, 1], [], []>} : vector<16x64xbf16>, vector<64x32xbf16>, vector<16x32xf32> -> vector<16x32xf32>
    %94 = arith.addf %89, %93 : vector<16x32xf32>
    %95 = vector.extract_strided_slice %43 {offsets = [160, 0], sizes = [16, 64], strides = [1, 1]} : vector<288x64xbf16> to vector<16x64xbf16>
    %c10 = arith.constant 10 : index
    %c0_64 = arith.constant 0 : index
    %c0_65 = arith.constant 0 : index
    %96 = vector.load %arg6[%c10, %c0_64, %c0_65] : memref<18x64x32xbf16, #tpu.memory_space<vmem>>, vector<1x64x32xbf16>
    %97 = vector.shape_cast %96 : vector<1x64x32xbf16> to vector<64x32xbf16>
    %cst_66 = arith.constant dense<0.000000e+00> : vector<16x32xf32>
    %98 = tpu.matmul %95, %97, %cst_66 {dimension_numbers = #tpu.dot_dimension_numbers<[1], [0], [0], [1], [0, 0, 1, 1], [], []>} : vector<16x64xbf16>, vector<64x32xbf16>, vector<16x32xf32> -> vector<16x32xf32>
    %99 = arith.addf %94, %98 : vector<16x32xf32>
    %100 = vector.extract_strided_slice %43 {offsets = [176, 0], sizes = [16, 64], strides = [1, 1]} : vector<288x64xbf16> to vector<16x64xbf16>
    %c11 = arith.constant 11 : index
    %c0_67 = arith.constant 0 : index
    %c0_68 = arith.constant 0 : index
    %101 = vector.load %arg6[%c11, %c0_67, %c0_68] : memref<18x64x32xbf16, #tpu.memory_space<vmem>>, vector<1x64x32xbf16>
    %102 = vector.shape_cast %101 : vector<1x64x32xbf16> to vector<64x32xbf16>
    %cst_69 = arith.constant dense<0.000000e+00> : vector<16x32xf32>
    %103 = tpu.matmul %100, %102, %cst_69 {dimension_numbers = #tpu.dot_dimension_numbers<[1], [0], [0], [1], [0, 0, 1, 1], [], []>} : vector<16x64xbf16>, vector<64x32xbf16>, vector<16x32xf32> -> vector<16x32xf32>
    %104 = arith.addf %99, %103 : vector<16x32xf32>
    %105 = vector.extract_strided_slice %43 {offsets = [192, 0], sizes = [16, 64], strides = [1, 1]} : vector<288x64xbf16> to vector<16x64xbf16>
    %c12 = arith.constant 12 : index
    %c0_70 = arith.constant 0 : index
    %c0_71 = arith.constant 0 : index
    %106 = vector.load %arg6[%c12, %c0_70, %c0_71] : memref<18x64x32xbf16, #tpu.memory_space<vmem>>, vector<1x64x32xbf16>
    %107 = vector.shape_cast %106 : vector<1x64x32xbf16> to vector<64x32xbf16>
    %cst_72 = arith.constant dense<0.000000e+00> : vector<16x32xf32>
    %108 = tpu.matmul %105, %107, %cst_72 {dimension_numbers = #tpu.dot_dimension_numbers<[1], [0], [0], [1], [0, 0, 1, 1], [], []>} : vector<16x64xbf16>, vector<64x32xbf16>, vector<16x32xf32> -> vector<16x32xf32>
    %109 = arith.addf %104, %108 : vector<16x32xf32>
    %110 = vector.extract_strided_slice %43 {offsets = [208, 0], sizes = [16, 64], strides = [1, 1]} : vector<288x64xbf16> to vector<16x64xbf16>
    %c13 = arith.constant 13 : index
    %c0_73 = arith.constant 0 : index
    %c0_74 = arith.constant 0 : index
    %111 = vector.load %arg6[%c13, %c0_73, %c0_74] : memref<18x64x32xbf16, #tpu.memory_space<vmem>>, vector<1x64x32xbf16>
    %112 = vector.shape_cast %111 : vector<1x64x32xbf16> to vector<64x32xbf16>
    %cst_75 = arith.constant dense<0.000000e+00> : vector<16x32xf32>
    %113 = tpu.matmul %110, %112, %cst_75 {dimension_numbers = #tpu.dot_dimension_numbers<[1], [0], [0], [1], [0, 0, 1, 1], [], []>} : vector<16x64xbf16>, vector<64x32xbf16>, vector<16x32xf32> -> vector<16x32xf32>
    %114 = arith.addf %109, %113 : vector<16x32xf32>
    %115 = vector.extract_strided_slice %43 {offsets = [224, 0], sizes = [16, 64], strides = [1, 1]} : vector<288x64xbf16> to vector<16x64xbf16>
    %c14 = arith.constant 14 : index
    %c0_76 = arith.constant 0 : index
    %c0_77 = arith.constant 0 : index
    %116 = vector.load %arg6[%c14, %c0_76, %c0_77] : memref<18x64x32xbf16, #tpu.memory_space<vmem>>, vector<1x64x32xbf16>
    %117 = vector.shape_cast %116 : vector<1x64x32xbf16> to vector<64x32xbf16>
    %cst_78 = arith.constant dense<0.000000e+00> : vector<16x32xf32>
    %118 = tpu.matmul %115, %117, %cst_78 {dimension_numbers = #tpu.dot_dimension_numbers<[1], [0], [0], [1], [0, 0, 1, 1], [], []>} : vector<16x64xbf16>, vector<64x32xbf16>, vector<16x32xf32> -> vector<16x32xf32>
    %119 = arith.addf %114, %118 : vector<16x32xf32>
    %120 = vector.extract_strided_slice %43 {offsets = [240, 0], sizes = [16, 64], strides = [1, 1]} : vector<288x64xbf16> to vector<16x64xbf16>
    %c15 = arith.constant 15 : index
    %c0_79 = arith.constant 0 : index
    %c0_80 = arith.constant 0 : index
    %121 = vector.load %arg6[%c15, %c0_79, %c0_80] : memref<18x64x32xbf16, #tpu.memory_space<vmem>>, vector<1x64x32xbf16>
    %122 = vector.shape_cast %121 : vector<1x64x32xbf16> to vector<64x32xbf16>
    %cst_81 = arith.constant dense<0.000000e+00> : vector<16x32xf32>
    %123 = tpu.matmul %120, %122, %cst_81 {dimension_numbers = #tpu.dot_dimension_numbers<[1], [0], [0], [1], [0, 0, 1, 1], [], []>} : vector<16x64xbf16>, vector<64x32xbf16>, vector<16x32xf32> -> vector<16x32xf32>
    %124 = arith.addf %119, %123 : vector<16x32xf32>
    %125 = vector.extract_strided_slice %43 {offsets = [256, 0], sizes = [16, 64], strides = [1, 1]} : vector<288x64xbf16> to vector<16x64xbf16>
    %c16 = arith.constant 16 : index
    %c0_82 = arith.constant 0 : index
    %c0_83 = arith.constant 0 : index
    %126 = vector.load %arg6[%c16, %c0_82, %c0_83] : memref<18x64x32xbf16, #tpu.memory_space<vmem>>, vector<1x64x32xbf16>
    %127 = vector.shape_cast %126 : vector<1x64x32xbf16> to vector<64x32xbf16>
    %cst_84 = arith.constant dense<0.000000e+00> : vector<16x32xf32>
    %128 = tpu.matmul %125, %127, %cst_84 {dimension_numbers = #tpu.dot_dimension_numbers<[1], [0], [0], [1], [0, 0, 1, 1], [], []>} : vector<16x64xbf16>, vector<64x32xbf16>, vector<16x32xf32> -> vector<16x32xf32>
    %129 = arith.addf %124, %128 : vector<16x32xf32>
    %130 = vector.extract_strided_slice %43 {offsets = [272, 0], sizes = [16, 64], strides = [1, 1]} : vector<288x64xbf16> to vector<16x64xbf16>
    %c17 = arith.constant 17 : index
    %c0_85 = arith.constant 0 : index
    %c0_86 = arith.constant 0 : index
    %131 = vector.load %arg6[%c17, %c0_85, %c0_86] : memref<18x64x32xbf16, #tpu.memory_space<vmem>>, vector<1x64x32xbf16>
    %132 = vector.shape_cast %131 : vector<1x64x32xbf16> to vector<64x32xbf16>
    %cst_87 = arith.constant dense<0.000000e+00> : vector<16x32xf32>
    %133 = tpu.matmul %130, %132, %cst_87 {dimension_numbers = #tpu.dot_dimension_numbers<[1], [0], [0], [1], [0, 0, 1, 1], [], []>} : vector<16x64xbf16>, vector<64x32xbf16>, vector<16x32xf32> -> vector<16x32xf32>
    %134 = arith.addf %129, %133 : vector<16x32xf32>
    %c0_88 = arith.constant 0 : index
    %c0_89 = arith.constant 0 : index
    %135 = vector.load %arg7[%c0_88, %c0_89] : memref<1x32xf32, #tpu.memory_space<vmem>>, vector<1x32xf32>
    %136 = vector.broadcast %135 : vector<1x32xf32> to vector<16x32xf32>
    %137 = arith.addf %134, %136 : vector<16x32xf32>
    %cst_90 = arith.constant 0.000000e+00 : f32
    %138 = vector.broadcast %cst_90 : f32 to vector<16x32xf32>
    %139 = arith.maximumf %137, %138 : vector<16x32xf32>
    %140 = arith.truncf %139 : vector<16x32xf32> to vector<16x32xbf16>
    %c0_91 = arith.constant 0 : index
    %c0_92 = arith.constant 0 : index
    %c0_93 = arith.constant 0 : index
    %141 = vector.load %arg8[%c0_91, %c0_92, %c0_93] : memref<3x32x32xbf16, #tpu.memory_space<vmem>>, vector<1x32x32xbf16>
    %142 = vector.shape_cast %141 : vector<1x32x32xbf16> to vector<32x32xbf16>
    %cst_94 = arith.constant dense<0.000000e+00> : vector<16x32xf32>
    %143 = tpu.matmul %140, %142, %cst_94 {dimension_numbers = #tpu.dot_dimension_numbers<[1], [0], [0], [1], [0, 0, 1, 1], [], []>} : vector<16x32xbf16>, vector<32x32xbf16>, vector<16x32xf32> -> vector<16x32xf32>
    %c0_95 = arith.constant 0 : index
    %c0_96 = arith.constant 0 : index
    %c0_97 = arith.constant 0 : index
    %144 = vector.load %arg9[%c0_95, %c0_96, %c0_97] : memref<3x1x32xf32, #tpu.memory_space<vmem>>, vector<1x1x32xf32>
    %145 = vector.shape_cast %144 : vector<1x1x32xf32> to vector<1x32xf32>
    %146 = vector.broadcast %145 : vector<1x32xf32> to vector<16x32xf32>
    %147 = arith.addf %143, %146 : vector<16x32xf32>
    %148 = arith.negf %147 : vector<16x32xf32>
    %149 = math.exp %148 : vector<16x32xf32>
    %cst_98 = arith.constant 1.000000e+00 : f32
    %150 = vector.broadcast %cst_98 : f32 to vector<16x32xf32>
    %151 = arith.addf %150, %149 : vector<16x32xf32>
    %152 = arith.divf %150, %151 : vector<16x32xf32>
    %c1_99 = arith.constant 1 : index
    %c0_100 = arith.constant 0 : index
    %c0_101 = arith.constant 0 : index
    %153 = vector.load %arg8[%c1_99, %c0_100, %c0_101] : memref<3x32x32xbf16, #tpu.memory_space<vmem>>, vector<1x32x32xbf16>
    %154 = vector.shape_cast %153 : vector<1x32x32xbf16> to vector<32x32xbf16>
    %cst_102 = arith.constant dense<0.000000e+00> : vector<16x32xf32>
    %155 = tpu.matmul %140, %154, %cst_102 {dimension_numbers = #tpu.dot_dimension_numbers<[1], [0], [0], [1], [0, 0, 1, 1], [], []>} : vector<16x32xbf16>, vector<32x32xbf16>, vector<16x32xf32> -> vector<16x32xf32>
    %c1_103 = arith.constant 1 : index
    %c0_104 = arith.constant 0 : index
    %c0_105 = arith.constant 0 : index
    %156 = vector.load %arg9[%c1_103, %c0_104, %c0_105] : memref<3x1x32xf32, #tpu.memory_space<vmem>>, vector<1x1x32xf32>
    %157 = vector.shape_cast %156 : vector<1x1x32xf32> to vector<1x32xf32>
    %158 = vector.broadcast %157 : vector<1x32xf32> to vector<16x32xf32>
    %159 = arith.addf %155, %158 : vector<16x32xf32>
    %160 = math.tanh %159 : vector<16x32xf32>
    %c2_106 = arith.constant 2 : index
    %c0_107 = arith.constant 0 : index
    %c0_108 = arith.constant 0 : index
    %161 = vector.load %arg8[%c2_106, %c0_107, %c0_108] : memref<3x32x32xbf16, #tpu.memory_space<vmem>>, vector<1x32x32xbf16>
    %162 = vector.shape_cast %161 : vector<1x32x32xbf16> to vector<32x32xbf16>
    %cst_109 = arith.constant dense<0.000000e+00> : vector<16x32xf32>
    %163 = tpu.matmul %140, %162, %cst_109 {dimension_numbers = #tpu.dot_dimension_numbers<[1], [0], [0], [1], [0, 0, 1, 1], [], []>} : vector<16x32xbf16>, vector<32x32xbf16>, vector<16x32xf32> -> vector<16x32xf32>
    %c2_110 = arith.constant 2 : index
    %c0_111 = arith.constant 0 : index
    %c0_112 = arith.constant 0 : index
    %164 = vector.load %arg9[%c2_110, %c0_111, %c0_112] : memref<3x1x32xf32, #tpu.memory_space<vmem>>, vector<1x1x32xf32>
    %165 = vector.shape_cast %164 : vector<1x1x32xf32> to vector<1x32xf32>
    %166 = vector.broadcast %165 : vector<1x32xf32> to vector<16x32xf32>
    %167 = arith.addf %163, %166 : vector<16x32xf32>
    %168 = arith.negf %167 : vector<16x32xf32>
    %169 = math.exp %168 : vector<16x32xf32>
    %cst_113 = arith.constant 1.000000e+00 : f32
    %170 = vector.broadcast %cst_113 : f32 to vector<16x32xf32>
    %171 = arith.addf %170, %169 : vector<16x32xf32>
    %172 = arith.divf %170, %171 : vector<16x32xf32>
    %173 = arith.mulf %152, %160 : vector<16x32xf32>
    %174 = math.tanh %173 : vector<16x32xf32>
    %175 = arith.mulf %172, %174 : vector<16x32xf32>
    %176 = arith.truncf %175 : vector<16x32xf32> to vector<16x32xbf16>
    %c0_114 = arith.constant 0 : index
    %c0_115 = arith.constant 0 : index
    %c0_116 = arith.constant 0 : index
    %177 = vector.load %arg10[%c0_114, %c0_115, %c0_116] : memref<3x32x32xbf16, #tpu.memory_space<vmem>>, vector<1x32x32xbf16>
    %178 = vector.shape_cast %177 : vector<1x32x32xbf16> to vector<32x32xbf16>
    %cst_117 = arith.constant dense<0.000000e+00> : vector<16x32xf32>
    %179 = tpu.matmul %176, %178, %cst_117 {dimension_numbers = #tpu.dot_dimension_numbers<[1], [0], [0], [1], [0, 0, 1, 1], [], []>} : vector<16x32xbf16>, vector<32x32xbf16>, vector<16x32xf32> -> vector<16x32xf32>
    %c0_118 = arith.constant 0 : index
    %c0_119 = arith.constant 0 : index
    %c0_120 = arith.constant 0 : index
    %180 = vector.load %arg11[%c0_118, %c0_119, %c0_120] : memref<3x1x32xf32, #tpu.memory_space<vmem>>, vector<1x1x32xf32>
    %181 = vector.shape_cast %180 : vector<1x1x32xf32> to vector<1x32xf32>
    %182 = vector.broadcast %181 : vector<1x32xf32> to vector<16x32xf32>
    %183 = arith.addf %179, %182 : vector<16x32xf32>
    %184 = arith.negf %183 : vector<16x32xf32>
    %185 = math.exp %184 : vector<16x32xf32>
    %cst_121 = arith.constant 1.000000e+00 : f32
    %186 = vector.broadcast %cst_121 : f32 to vector<16x32xf32>
    %187 = arith.addf %186, %185 : vector<16x32xf32>
    %188 = arith.divf %186, %187 : vector<16x32xf32>
    %c1_122 = arith.constant 1 : index
    %c0_123 = arith.constant 0 : index
    %c0_124 = arith.constant 0 : index
    %189 = vector.load %arg10[%c1_122, %c0_123, %c0_124] : memref<3x32x32xbf16, #tpu.memory_space<vmem>>, vector<1x32x32xbf16>
    %190 = vector.shape_cast %189 : vector<1x32x32xbf16> to vector<32x32xbf16>
    %cst_125 = arith.constant dense<0.000000e+00> : vector<16x32xf32>
    %191 = tpu.matmul %176, %190, %cst_125 {dimension_numbers = #tpu.dot_dimension_numbers<[1], [0], [0], [1], [0, 0, 1, 1], [], []>} : vector<16x32xbf16>, vector<32x32xbf16>, vector<16x32xf32> -> vector<16x32xf32>
    %c1_126 = arith.constant 1 : index
    %c0_127 = arith.constant 0 : index
    %c0_128 = arith.constant 0 : index
    %192 = vector.load %arg11[%c1_126, %c0_127, %c0_128] : memref<3x1x32xf32, #tpu.memory_space<vmem>>, vector<1x1x32xf32>
    %193 = vector.shape_cast %192 : vector<1x1x32xf32> to vector<1x32xf32>
    %194 = vector.broadcast %193 : vector<1x32xf32> to vector<16x32xf32>
    %195 = arith.addf %191, %194 : vector<16x32xf32>
    %196 = math.tanh %195 : vector<16x32xf32>
    %c2_129 = arith.constant 2 : index
    %c0_130 = arith.constant 0 : index
    %c0_131 = arith.constant 0 : index
    %197 = vector.load %arg10[%c2_129, %c0_130, %c0_131] : memref<3x32x32xbf16, #tpu.memory_space<vmem>>, vector<1x32x32xbf16>
    %198 = vector.shape_cast %197 : vector<1x32x32xbf16> to vector<32x32xbf16>
    %cst_132 = arith.constant dense<0.000000e+00> : vector<16x32xf32>
    %199 = tpu.matmul %176, %198, %cst_132 {dimension_numbers = #tpu.dot_dimension_numbers<[1], [0], [0], [1], [0, 0, 1, 1], [], []>} : vector<16x32xbf16>, vector<32x32xbf16>, vector<16x32xf32> -> vector<16x32xf32>
    %c2_133 = arith.constant 2 : index
    %c0_134 = arith.constant 0 : index
    %c0_135 = arith.constant 0 : index
    %200 = vector.load %arg11[%c2_133, %c0_134, %c0_135] : memref<3x1x32xf32, #tpu.memory_space<vmem>>, vector<1x1x32xf32>
    %201 = vector.shape_cast %200 : vector<1x1x32xf32> to vector<1x32xf32>
    %202 = vector.broadcast %201 : vector<1x32xf32> to vector<16x32xf32>
    %203 = arith.addf %199, %202 : vector<16x32xf32>
    %204 = arith.negf %203 : vector<16x32xf32>
    %205 = math.exp %204 : vector<16x32xf32>
    %cst_136 = arith.constant 1.000000e+00 : f32
    %206 = vector.broadcast %cst_136 : f32 to vector<16x32xf32>
    %207 = arith.addf %206, %205 : vector<16x32xf32>
    %208 = arith.divf %206, %207 : vector<16x32xf32>
    %209 = arith.mulf %188, %196 : vector<16x32xf32>
    %210 = math.tanh %209 : vector<16x32xf32>
    %211 = arith.mulf %208, %210 : vector<16x32xf32>
    %212 = tpu.concatenate %175, %211 in 1 : vector<16x32xf32>, vector<16x32xf32> -> vector<16x64xf32>
    %213 = arith.truncf %212 : vector<16x64xf32> to vector<16x64xbf16>
    %c0_137 = arith.constant 0 : index
    %c0_138 = arith.constant 0 : index
    %214 = vector.load %arg12[%c0_137, %c0_138] : memref<64x4xbf16, #tpu.memory_space<vmem>>, vector<64x4xbf16>
    %cst_139 = arith.constant dense<0.000000e+00> : vector<16x4xf32>
    %215 = tpu.matmul %213, %214, %cst_139 {dimension_numbers = #tpu.dot_dimension_numbers<[1], [0], [0], [1], [0, 0, 1, 1], [], []>} : vector<16x64xbf16>, vector<64x4xbf16>, vector<16x4xf32> -> vector<16x4xf32>
    %c0_140 = arith.constant 0 : index
    %c0_141 = arith.constant 0 : index
    %216 = vector.load %arg13[%c0_140, %c0_141] : memref<1x4xf32, #tpu.memory_space<vmem>>, vector<1x4xf32>
    %217 = vector.broadcast %216 : vector<1x4xf32> to vector<16x4xf32>
    %218 = arith.addf %215, %217 : vector<16x4xf32>
    %c0_142 = arith.constant 0 : index
    %c0_143 = arith.constant 0 : index
    %c0_144 = arith.constant 0 : index
    %219 = vector.load %arg14[%c0_142, %c0_143, %c0_144] : memref<1x16x4xf32, #tpu.memory_space<vmem>>, vector<1x16x4xf32>
    %220 = vector.shape_cast %219 : vector<1x16x4xf32> to vector<16x4xf32>
    %221 = vector.shape_cast %218 : vector<16x4xf32> to vector<1x16x4xf32>
    tpu.vector_store %arg14[%c0_142, %c0_143, %c0_144], %221 {strides = array<i32>} : memref<1x16x4xf32, #tpu.memory_space<vmem>>, vector<1x16x4xf32>,
    return
  }
  func.func @transform_0(%arg0: i32) -> (i32, i32, i32) {
    %c0_i32 = arith.constant 0 : i32
    %c0_i32_0 = arith.constant 0 : i32
    %c0_i32_1 = arith.constant 0 : i32
    return %arg0, %c0_i32, %c0_i32_0 : i32, i32, i32
  }
  func.func @transform_1(%arg0: i32) -> (i32, i32, i32) {
    %c0_i32 = arith.constant 0 : i32
    %c0_i32_0 = arith.constant 0 : i32
    %c0_i32_1 = arith.constant 0 : i32
    %c0_i32_2 = arith.constant 0 : i32
    return %c0_i32, %c0_i32_0, %c0_i32_1 : i32, i32, i32
  }
  func.func @transform_2(%arg0: i32) -> (i32, i32) {
    %c0_i32 = arith.constant 0 : i32
    %c0_i32_0 = arith.constant 0 : i32
    %c0_i32_1 = arith.constant 0 : i32
    return %c0_i32, %c0_i32_0 : i32, i32
  }
  func.func @transform_3(%arg0: i32) -> (i32, i32, i32) {
    %c0_i32 = arith.constant 0 : i32
    %c0_i32_0 = arith.constant 0 : i32
    %c0_i32_1 = arith.constant 0 : i32
    %c0_i32_2 = arith.constant 0 : i32
    return %c0_i32, %c0_i32_0, %c0_i32_1 : i32, i32, i32
  }
  func.func @transform_4(%arg0: i32) -> (i32, i32) {
    %c0_i32 = arith.constant 0 : i32
    %c0_i32_0 = arith.constant 0 : i32
    %c0_i32_1 = arith.constant 0 : i32
    return %c0_i32, %c0_i32_0 : i32, i32
  }
  func.func @transform_5(%arg0: i32) -> (i32, i32, i32) {
    %c0_i32 = arith.constant 0 : i32
    %c0_i32_0 = arith.constant 0 : i32
    %c0_i32_1 = arith.constant 0 : i32
    %c0_i32_2 = arith.constant 0 : i32
    return %c0_i32, %c0_i32_0, %c0_i32_1 : i32, i32, i32
  }
  func.func @transform_6(%arg0: i32) -> (i32, i32) {
    %c0_i32 = arith.constant 0 : i32
    %c0_i32_0 = arith.constant 0 : i32
    %c0_i32_1 = arith.constant 0 : i32
    return %c0_i32, %c0_i32_0 : i32, i32
  }
  func.func @transform_7(%arg0: i32) -> (i32, i32, i32) {
    %c0_i32 = arith.constant 0 : i32
    %c0_i32_0 = arith.constant 0 : i32
    %c0_i32_1 = arith.constant 0 : i32
    %c0_i32_2 = arith.constant 0 : i32
    return %c0_i32, %c0_i32_0, %c0_i32_1 : i32, i32, i32
  }
  func.func @transform_8(%arg0: i32) -> (i32, i32, i32) {
    %c0_i32 = arith.constant 0 : i32
    %c0_i32_0 = arith.constant 0 : i32
    %c0_i32_1 = arith.constant 0 : i32
    %c0_i32_2 = arith.constant 0 : i32
    return %c0_i32, %c0_i32_0, %c0_i32_1 : i32, i32, i32
  }
  func.func @transform_9(%arg0: i32) -> (i32, i32, i32) {
    %c0_i32 = arith.constant 0 : i32
    %c0_i32_0 = arith.constant 0 : i32
    %c0_i32_1 = arith.constant 0 : i32
    %c0_i32_2 = arith.constant 0 : i32
    return %c0_i32, %c0_i32_0, %c0_i32_1 : i32, i32, i32
  }
  func.func @transform_10(%arg0: i32) -> (i32, i32, i32) {
    %c0_i32 = arith.constant 0 : i32
    %c0_i32_0 = arith.constant 0 : i32
    %c0_i32_1 = arith.constant 0 : i32
    %c0_i32_2 = arith.constant 0 : i32
    return %c0_i32, %c0_i32_0, %c0_i32_1 : i32, i32, i32
  }
  func.func @transform_11(%arg0: i32) -> (i32, i32) {
    %c0_i32 = arith.constant 0 : i32
    %c0_i32_0 = arith.constant 0 : i32
    %c0_i32_1 = arith.constant 0 : i32
    return %c0_i32, %c0_i32_0 : i32, i32
  }
  func.func @transform_12(%arg0: i32) -> (i32, i32) {
    %c0_i32 = arith.constant 0 : i32
    %c0_i32_0 = arith.constant 0 : i32
    %c0_i32_1 = arith.constant 0 : i32
    return %c0_i32, %c0_i32_0 : i32, i32
  }
  func.func @transform_13(%arg0: i32) -> (i32, i32, i32) {
    %c0_i32 = arith.constant 0 : i32
    %c0_i32_0 = arith.constant 0 : i32
    %c0_i32_1 = arith.constant 0 : i32
    return %arg0, %c0_i32, %c0_i32_0 : i32, i32, i32
  }
}

</mosaic_0001>

<bundles_post_ra>
// kernel: tpu_custom_call.1
= control target key start
LH: loop header
LB: loop body
LE: loop exit
PB: predicated region body
PF: predicated region fallthrough
CT: control target
= control target key end

     0   :  { %vm233_vm0 = vcmask 1041408   ;;  %vm178_vm1 = vcmask 31744   ;;  %vm812_vm2 = vcmask 261120   ;;  %vm1382_vm3 = vcmask 523264   ;;  %s4913_s1 = inlined_call_operand.vmem [shape: bf16[3,4,32], index: 1, kind: input, shape index: {}]   ;;  %s4914_s0 = inlined_call_operand.vmem [shape: bf16[1,320,4], index: 0, kind: input, shape index: {}]   ;;  %s4915_s2 = inlined_call_operand.vmem [shape: f32[1,32], index: 2, kind: input, shape index: {}]   ;;  %s4916_s3 = inlined_call_operand.vmem [shape: bf16[3,32,64], index: 3, kind: input, shape index: {}]   ;;  %s4917_s5 = inlined_call_operand.vmem [shape: bf16[18,64,32], index: 5, kind: input, shape index: {}]   ;;  %s4918_s4 = inlined_call_operand.vmem [shape: f32[1,64], index: 4, kind: input, shape index: {}]   ;;  %s4919_s6 = inlined_call_operand.vmem [shape: f32[1,32], index: 6, kind: input, shape index: {}]   ;;  %s4920_s8 = inlined_call_operand.vmem [shape: f32[3,1,32], index: 8, kind: input, shape index: {}]   ;;  %s4921_s7 = inlined_call_operand.vmem [shape: bf16[3,32,32], index: 7, kind: input, shape index: {}]   ;;  %s4922_s10 = inlined_call_operand.vmem [shape: f32[3,1,32], index: 10, kind: input, shape index: {}]   ;;  %s4923_s9 = inlined_call_operand.vmem [shape: bf16[3,32,32], index: 9, kind: input, shape index: {}]   ;;  %s4924_s11 = inlined_call_operand.vmem [shape: bf16[64,4], index: 11, kind: input, shape index: {}]   ;;  %s4925_s12 = inlined_call_operand.vmem [shape: f32[1,4], index: 12, kind: input, shape index: {}]   ;;  %s4926_s13 = inlined_call_operand.vmem [shape: f32[1,16,4], index: 13, kind: output, shape index: {}]  }
   0x1   :  { %v2824_v0 = vld [vmem:[%s4913_s1 + $0x2] sm:$0x3]  ;;  %v85_v1 = vld [vmem:[%s4913_s1] sm:$0x3]  ;;  %v3586_v4 = vld [vmem:[%s4914_s0 + $0x8] sm:$0xff] }
   0x2   :  { %v235_v2 = vsel %vm233_vm0, %v2824_v0, 0  ;;  %v345_v3 = vsel %vm233_vm0, %v85_v1, 0  ;;  %v3849_v5 = vld [vmem:[%s4914_s0 + $0x80] sm:$0xff]  ;;  %v3587_v9 = vld [vmem:[%s4914_s0 + $0x10] sm:$0xff]  ;;  %v3867_v10 = vld [vmem:[%s4914_s0 + $0x88] sm:$0xff] }
   0x3   :  { %v2937_v6 = vld [vmem:[%s4913_s1 + $0x4] sm:$0x3]  ;;  %244 = vmatpush.bf16.msra.mxu0 %v235_v2  ;;  %3699 = vmatpush.bf16.msra.mxu2 %v235_v2  ;;  %v3588_v11 = vld [vmem:[%s4914_s0 + $0x18] sm:$0xff]  ;;  %v3879_v12 = vld [vmem:[%s4914_s0 + $0x90] sm:$0xff] }
   0x4   :  { %v3585_v7 = vld [vmem:[%s4914_s0] sm:$0xff]  ;;  %v457_v8 = vsel %vm233_vm0, %v2937_v6, 0  ;;  %354 = vmatpush.bf16.msra.mxu1 %v345_v3  ;;  %v3590_v14 = vld [vmem:[%s4914_s0 + $0x28] sm:$0xff]  ;;  %v3591_v15 = vld [vmem:[%s4914_s0 + $0x30] sm:$0xff] }
   0x5   :  { %v3589_v13 = vld [vmem:[%s4914_s0 + $0x20] sm:$0xff]  ;;  %v3592_v16 = vld [vmem:[%s4914_s0 + $0x38] sm:$0xff]  ;;  %v3594_v18 = vld [vmem:[%s4914_s0 + $0x48] sm:$0xff] }
   0x6   :  { %2897 = vmatmul.msk.bf16.vlgmr.msra.gmra.mxu0 %vm178_vm1, %v3586_v4  ;;  %2912 = vmatmul.msk.bf16.vlgmr.msra.gmra.mxu2 %vm178_vm1, %v3849_v5  ;;  %v3593_v17 = vld [vmem:[%s4914_s0 + $0x40] sm:$0xff]  ;;  %v3595_v25 = vld [vmem:[%s4914_s0 + $0x50] sm:$0xff]  ;;  %v3596_v32 = vld [vmem:[%s4914_s0 + $0x58] sm:$0xff] }
   0x7   :  { %466 = vmatpush.bf16.msrb.mxu2 %v457_v8  ;;  %2919 = vmatmul.msk.bf16.vlgmr.msra.gmra.mxu1 %vm178_vm1, %v3585_v7  ;;  %v3597_v39 = vld [vmem:[%s4914_s0 + $0x60] sm:$0xff]  ;;  %v3608_v42 = vld [vmem:[%s4916_s3 + $0x8] sm:$0xff]  ;;  %v3606_v55 = vld [vmem:[%s4916_s3 + $0x18] sm:$0xff] }
   0x8   :  { %3700 = vmatpush.bf16.msra.mxu3 %v3608_v42  ;;  %870 = vmatpush.bf16.msrb.mxu1 %v3608_v42  ;;  %v3607_v44 = vld [vmem:[%s4916_s3] sm:$0xff]  ;;  %v3598_v48 = vld [vmem:[%s4914_s0 + $0x68] sm:$0xff]  ;;  %v4006_v0 = vld [vmem:[%s4914_s0 + $0x70] sm:$0xff] }
   0x9   :  { %v3610_v49 = vld [vmem:[%s4916_s3 + $0x28] sm:$0xff]  ;;  %v3998_v57 = vld [vmem:[%s4915_s2] ss:$0 sm:$0xff]  ;;  %1095 = vmatpush.bf16.msrb.mxu0 %v3606_v55  ;;  %v3605_v1 = vld [vmem:[%s4916_s3 + $0x10] sm:$0xff] }
   0xc   :  { %3701 = vmatpush.bf16.msra.mxu3 %v3607_v44  ;;  %871 = vmatpush.bf16.msrb.mxu1 %v3607_v44 }
   0xd   :  { %1096 = vmatpush.bf16.msrb.mxu0 %v3605_v1 }
  0x10   :  { %989 = vmatpush.bf16.msrb.mxu3 %v3610_v49 }
  0x16   :  { %2898 = vmatmul.msk.bf16.gmra.mxu0 %vm178_vm1, %v3587_v9  ;;  %2913 = vmatmul.msk.bf16.gmra.mxu2 %vm178_vm1, %v3867_v10 }
  0x17   :  { %2920 = vmatmul.msk.bf16.gmra.mxu1 %vm178_vm1, %v3586_v4 }
  0x26   :  { %2899 = vmatmul.msk.bf16.gmra.mxu0 %vm178_vm1, %v3588_v11  ;;  %2914 = vmatmul.msk.bf16.gmra.mxu2 %vm178_vm1, %v3879_v12 }
  0x27   :  { %2921 = vmatmul.msk.bf16.gmra.mxu1 %vm178_vm1, %v3587_v9 }
  0x36   :  { %2900 = vmatmul.msk.bf16.gmra.mxu0 %vm178_vm1, %v3589_v13  ;;  %2942 = vmatmul.msk.bf16.vlgmr.msrb.gmra.mxu2 %vm178_vm1, %v3587_v9 }
  0x37   :  { %2922 = vmatmul.msk.bf16.gmra.mxu1 %vm178_vm1, %v3588_v11 }
  0x46   :  { %2901 = vmatmul.msk.bf16.gmra.mxu0 %vm178_vm1, %v3590_v14  ;;  %2943 = vmatmul.msk.bf16.gmra.mxu2 %vm178_vm1, %v3588_v11 }
  0x47   :  { %2923 = vmatmul.msk.bf16.gmra.mxu1 %vm178_vm1, %v3589_v13 }
  0x56   :  { %2902 = vmatmul.msk.bf16.gmra.mxu0 %vm178_vm1, %v3591_v15  ;;  %2944 = vmatmul.msk.bf16.gmra.mxu2 %vm178_vm1, %v3589_v13 }
  0x57   :  { %2924 = vmatmul.msk.bf16.gmra.mxu1 %vm178_vm1, %v3590_v14 }
  0x66   :  { %2903 = vmatmul.msk.bf16.gmra.mxu0 %vm178_vm1, %v3592_v16  ;;  %2945 = vmatmul.msk.bf16.gmra.mxu2 %vm178_vm1, %v3590_v14 }
  0x67   :  { %2925 = vmatmul.msk.bf16.gmra.mxu1 %vm178_vm1, %v3591_v15 }
  0x76   :  { %2904 = vmatmul.msk.bf16.gmra.mxu0 %vm178_vm1, %v3593_v17  ;;  %2946 = vmatmul.msk.bf16.gmra.mxu2 %vm178_vm1, %v3591_v15 }
  0x77   :  { %2926 = vmatmul.msk.bf16.gmra.mxu1 %vm178_vm1, %v3592_v16 }
  0x83   :  { %v3918_v19 = vpop.f32.mrf.mxu0 }
  0x84   :  { %v3920_v20 = vpop.f32.mrf.mxu1 }
  0x86   :  { %2905 = vmatmul.msk.bf16.gmra.mxu0 %vm178_vm1, %v3594_v18  ;;  %2947 = vmatmul.msk.bf16.gmra.mxu2 %vm178_vm1, %v3592_v16 }
  0x87   :  { %2927 = vmatmul.msk.bf16.gmra.mxu1 %vm178_vm1, %v3593_v17 }
  0x89   :  { %v3925_v21 = vpop.f32.mrf.mxu2 }
  0x8b   :  { %v3927_v22 = vpop.f32.mrf.mxu0 }
  0x8c   :  { %v3929_v23 = vpop.f32.mrf.mxu1 }
  0x91   :  { %v3931_v24 = vpop.f32.mrf.mxu2 }
  0x93   :  { %v251_v26 = vpop.f32.mrf.mxu0 }
  0x94   :  { %v361_v27 = vpop.f32.mrf.mxu1 }
  0x95   :  { %v362_v52 = vadd.f32 %v361_v27, %v251_v26 }
  0x96   :  { %2906 = vmatmul.msk.bf16.gmra.mxu0 %vm178_vm1, %v3595_v25  ;;  %2948 = vmatmul.msk.bf16.gmra.mxu2 %vm178_vm1, %v3593_v17 }
  0x97   :  { %2928 = vmatmul.msk.bf16.gmra.mxu1 %vm178_vm1, %v3594_v18 }
  0x99   :  { %v3939_v28 = vpop.f32.mrf.mxu2 }
  0x9b   :  { %v253_v29 = vpop.f32.mrf.mxu0 }
  0x9c   :  { %v363_v30 = vpop.f32.mrf.mxu1 }
  0x9d   :  { %v364_v60 = vadd.f32 %v363_v30, %v253_v29 }
  0xa1   :  { %v3941_v31 = vpop.f32.mrf.mxu2 }
  0xa3   :  { %v256_v33 = vpop.f32.mrf.mxu0 }
  0xa4   :  { %v366_v34 = vpop.f32.mrf.mxu1 }
  0xa5   :  { %v367_v4 = vadd.f32 %v366_v34, %v256_v33 }
  0xa6   :  { %2907 = vmatmul.msk.bf16.gmra.mxu0 %vm178_vm1, %v3596_v32  ;;  %2949 = vmatmul.msk.bf16.gmra.mxu2 %vm178_vm1, %v3594_v18  ;;  %v357_v18 = vadd.f32 %v3920_v20, %v3918_v19  ;;  %v3600_v19 = vld [vmem:[%s4914_s0 + $0x78] sm:$0xff] }
  0xa7   :  { %2929 = vmatmul.msk.bf16.gmra.mxu1 %vm178_vm1, %v3595_v25 }
  0xa9   :  { %v3949_v35 = vpop.f32.mrf.mxu2 }
  0xab   :  { %v3951_v36 = vpop.f32.mrf.mxu0 }
  0xac   :  { %v3953_v37 = vpop.f32.mrf.mxu1 }
  0xad   :  { %v369_v27 = vadd.f32 %v3953_v37, %v3951_v36 }
  0xb1   :  { %v3955_v38 = vpop.f32.mrf.mxu2 }
  0xb3   :  { %v3960_v40 = vpop.f32.mrf.mxu0 }
  0xb4   :  { %v3962_v41 = vpop.f32.mrf.mxu1 }
  0xb5   :  { %v372_v36 = vadd.f32 %v3962_v41, %v3960_v40 }
  0xb6   :  { %2908 = vmatmul.msk.bf16.gmra.mxu0 %vm178_vm1, %v3597_v39  ;;  %2950 = vmatmul.msk.bf16.gmra.mxu2 %vm178_vm1, %v3595_v25  ;;  %v359_v25 = vadd.f32 %v3929_v23, %v3927_v22 }
  0xb7   :  { %2930 = vmatmul.msk.bf16.gmra.mxu1 %vm178_vm1, %v3596_v32 }
  0xb9   :  { %v468_v43 = vpop.f32.mrf.mxu2 }
  0xba   :  { %v558_v33 = vadd.f32 %v468_v43, %v357_v18 }
  0xbb   :  { %v3973_v45 = vpop.f32.mrf.mxu0 }
  0xbc   :  { %v3975_v46 = vpop.f32.mrf.mxu1  ;;  %v598_v37 = vadd.f32 %v3998_v57, %v558_v33 }
  0xc1   :  { %v470_v47 = vpop.f32.mrf.mxu2 }
  0xc2   :  { %v559_v29 = vadd.f32 %v470_v47, %v359_v25 }
  0xc3   :  { %v3983_v50 = vpop.f32.mrf.mxu0 }
  0xc4   :  { %v3985_v51 = vpop.f32.mrf.mxu1  ;;  %v599_v22 = vadd.f32 %v3998_v57, %v559_v29 }
  0xc6   :  { %2909 = vmatmul.msk.bf16.gmra.mxu0 %vm178_vm1, %v3598_v48  ;;  %2951 = vmatmul.msk.bf16.gmra.mxu2 %vm178_vm1, %v3596_v32  ;;  %v635_v43 = vmax.f32 %v599_v22, 0.0 }
  0xc7   :  { %2931 = vmatmul.msk.bf16.gmra.mxu1 %vm178_vm1, %v3597_v39 }
  0xc9   :  { %v473_v53 = vpop.f32.mrf.mxu2 }
  0xca   :  { %v560_v54 = vadd.f32 %v473_v53, %v362_v52  ;;  %v634_v52 = vmax.f32 %v598_v37, 0.0 }
  0xcb   :  { %v3993_v56 = vpop.f32.mrf.mxu0 }
  0xcc   :  { %v4000_v58 = vpop.f32.mrf.mxu1  ;;  %v600_v59 = vadd.f32 %v3998_v57, %v560_v54 }
  0xce   :  { %v636_v62 = vmax.f32 %v600_v59, 0.0  ;;  %v671_v59 = vpack.c.bf16 %v635_v43, %v635_v43 }
  0xd0   :  { %v672_v6 = vpack.c.bf16 %v636_v62, %v636_v62  ;;  %v374_v62 = vadd.f32 %v3975_v46, %v3973_v45 }
  0xd1   :  { %v475_v61 = vpop.f32.mrf.mxu2 }
  0xd2   :  { %v561_v63 = vadd.f32 %v475_v61, %v364_v60  ;;  %v751_v13 = vunpack.c.l.b16 %v672_v6  ;;  %v670_v61 = vpack.c.bf16 %v634_v52, %v634_v52 }
  0xd3   :  { %v4011_v2 = vpop.f32.mrf.mxu0 }
  0xd4   :  { %v601_v3 = vadd.f32 %v3998_v57, %v561_v63  ;;  %v4014_v8 = vpop.f32.mrf.mxu1  ;;  %v750_v63 = vunpack.c.l.b16 %v671_v59 }
  0xd6   :  { %v637_v7 = vmax.f32 %v601_v3, 0.0  ;;  %2910 = vmatmul.msk.bf16.gmra.mxu0 %vm178_vm1, %v4006_v0  ;;  %2952 = vmatmul.msk.bf16.gmra.mxu2 %vm178_vm1, %v3597_v39  ;;  %v749_v3 = vunpack.c.l.b16 %v670_v61 }
  0xd7   :  { %2932 = vmatmul.msk.bf16.gmra.mxu1 %vm178_vm1, %v3598_v48 }
  0xd8   :  { %v673_v9 = vpack.c.bf16 %v637_v7, %v637_v7 }
  0xd9   :  { %v478_v11 = vpop.f32.mrf.mxu2 }
  0xda   :  { %v752_v14 = vunpack.c.l.b16 %v673_v9  ;;  %v562_v15 = vadd.f32 %v478_v11, %v367_v4  ;;  %v4062_v9 = vpack.c.b16 %v750_v63, %v749_v3 }
  0xdb   :  { %v4020_v16 = vpop.f32.mrf.mxu0 }
  0xdc   :  { %v4022_v17 = vpack.c.b16 %v752_v14, %v751_v13  ;;  %v602_v26 = vadd.f32 %v3998_v57, %v562_v15  ;;  %v4033_v30 = vpop.f32.mrf.mxu1  ;;  %v377_v14 = vadd.f32 %v3985_v51, %v3983_v50 }
  0xde   :  { %2973 = vmatmul.msk.bf16.vlgmr.msra.gmra.mxu3 %vm812_vm2, %v4022_v17  ;;  %v638_v34 = vmax.f32 %v602_v26, 0.0 }
  0xe0   :  { %v674_v42 = vpack.c.bf16 %v638_v34, %v638_v34 }
  0xe1   :  { %v480_v32 = vpop.f32.mrf.mxu2 }
  0xe2   :  { %v563_v39 = vadd.f32 %v480_v32, %v369_v27  ;;  %v753_v53 = vunpack.c.l.b16 %v674_v42 }
  0xe3   :  { %v4038_v20 = vpop.f32.mrf.mxu0 }
  0xe4   :  { %v603_v23 = vadd.f32 %v3998_v57, %v563_v39  ;;  %v4049_v55 = vpop.f32.mrf.mxu1 }
  0xe6   :  { %v639_v44 = vmax.f32 %v603_v23, 0.0  ;;  %2911 = vmatmul.msk.bf16.gmra.mxu0 %vm178_vm1, %v3600_v19  ;;  %2953 = vmatmul.msk.bf16.gmra.mxu2 %vm178_vm1, %v3598_v48 }
  0xe7   :  { %2933 = vmatmul.msk.bf16.gmra.mxu1 %vm178_vm1, %v4006_v0 }
  0xe8   :  { %v675_v47 = vpack.c.bf16 %v639_v44, %v639_v44 }
  0xe9   :  { %v483_v49 = vpop.f32.mrf.mxu2 }
  0xea   :  { %v754_v54 = vunpack.c.l.b16 %v675_v47  ;;  %v564_v40 = vadd.f32 %v483_v49, %v372_v36  ;;  %v382_v36 = vadd.f32 %v4014_v8, %v4011_v2  ;;  %v384_v8 = vadd.f32 %v4033_v30, %v4020_v16 }
  0xeb   :  { %v4051_v41 = vpop.f32.mrf.mxu0 }
  0xec   :  { %v4053_v60 = vpack.c.b16 %v754_v54, %v753_v53  ;;  %v604_v48 = vadd.f32 %v3998_v57, %v564_v40  ;;  %v4064_v11 = vpop.f32.mrf.mxu1 }
  0xee   :  { %2974 = vmatmul.msk.bf16.gmra.mxu3 %vm812_vm2, %v4053_v60  ;;  %v640_v4 = vmax.f32 %v604_v48, 0.0 }
  0xf0   :  { %v676_v15 = vpack.c.bf16 %v640_v4, %v640_v4 }
  0xf1   :  { %v485_v1 = vpop.f32.mrf.mxu2 }
  0xf2   :  { %v565_v6 = vadd.f32 %v485_v1, %v374_v62  ;;  %v755_v25 = vunpack.c.l.b16 %v676_v15  ;;  %v387_v62 = vadd.f32 %v4049_v55, %v4038_v20 }
  0xf3   :  { %v4060_v7 = vpop.f32.mrf.mxu0 }
  0xf4   :  { %v605_v13 = vadd.f32 %v3998_v57, %v565_v6  ;;  %v391_v50 = vpop.f32.mrf.mxu1 }
  0xf6   :  { %v641_v18 = vmax.f32 %v605_v13, 0.0  ;;  %2954 = vmatmul.msk.bf16.gmra.mxu2 %vm178_vm1, %v4006_v0  ;;  %3026 = vmatmul.msk.bf16.vlgmr.msrb.gmra.mxu0 %vm812_vm2, %v4062_v9  ;;  %v379_v0 = vadd.f32 %v4000_v58, %v3993_v56 }
  0xf7   :  { %2934 = vmatmul.msk.bf16.gmra.mxu1 %vm178_vm1, %v3600_v19 }
  0xf8   :  { %v677_v45 = vpack.c.bf16 %v641_v18, %v641_v18 }
  0xf9   :  { %v488_v46 = vpop.f32.mrf.mxu2 }
  0xfa   :  { %v756_v26 = vunpack.c.l.b16 %v677_v45  ;;  %v566_v27 = vadd.f32 %v488_v46, %v377_v14 }
  0xfb   :  { %v4074_v29 = vpop.f32.mrf.mxu0 }
  0xfc   :  { %v4076_v32 = vpack.c.b16 %v756_v26, %v755_v25  ;;  %v606_v51 = vadd.f32 %v3998_v57, %v566_v27  ;;  %v393_v56 = vpop.f32.mrf.mxu1  ;;  %v392_v26 = vadd.f32 %v391_v50, %v4060_v7 }
  0xfe   :  { %2975 = vmatmul.msk.bf16.gmra.mxu3 %vm812_vm2, %v4076_v32  ;;  %v642_v34 = vmax.f32 %v606_v51, 0.0 }
 0x100   :  { %v678_v37 = vpack.c.bf16 %v642_v34, %v642_v34 }
 0x101   :  { %v490_v33 = vpop.f32.mrf.mxu2 }
 0x102   :  { %v567_v39 = vadd.f32 %v490_v33, %v379_v0  ;;  %v757_v43 = vunpack.c.l.b16 %v678_v37 }
 0x103   :  { %v4083_v22 = vpop.f32.mrf.mxu0 }
 0x104   :  { %v607_v23 = vadd.f32 %v3998_v57, %v567_v39  ;;  %v396_v54 = vpop.f32.mrf.mxu1 }
 0x106   :  { %v643_v42 = vmax.f32 %v607_v23, 0.0  ;;  %2955 = vmatmul.msk.bf16.gmra.mxu2 %vm178_vm1, %v3600_v19  ;;  %3027 = vmatmul.msk.bf16.gmra.mxu0 %vm812_vm2, %v4022_v17 }
 0x107   :  { %2935 = vmatmul.msk.bf16.gmra.mxu1 %vm178_vm1, %v3849_v5 }
 0x108   :  { %v679_v58 = vpack.c.bf16 %v643_v42, %v643_v42 }
 0x109   :  { %v493_v44 = vpop.f32.mrf.mxu2 }
 0x10a   :  { %v758_v47 = vunpack.c.l.b16 %v679_v58  ;;  %v568_v49 = vadd.f32 %v493_v44, %v382_v36 }
 0x10b   :  { %v4093_v52 = vpop.f32.mrf.mxu0 }
 0x10c   :  { %v4095_v53 = vpack.c.b16 %v758_v47, %v757_v43  ;;  %v608_v2 = vadd.f32 %v3998_v57, %v568_v49  ;;  %v398_v14 = vpop.f32.mrf.mxu1  ;;  %v397_v43 = vadd.f32 %v396_v54, %v4083_v22 }
 0x10e   :  { %2976 = vmatmul.msk.bf16.gmra.mxu3 %vm812_vm2, %v4095_v53  ;;  %v644_v40 = vmax.f32 %v608_v2, 0.0 }
 0x110   :  { %v680_v63 = vpack.c.bf16 %v644_v40, %v644_v40 }
 0x111   :  { %v495_v19 = vpop.f32.mrf.mxu2 }
 0x112   :  { %v569_v59 = vadd.f32 %v495_v19, %v384_v8  ;;  %v759_v3 = vunpack.c.l.b16 %v680_v63 }
 0x113   :  { %v4102_v61 = vpop.f32.mrf.mxu0 }
 0x114   :  { %v609_v48 = vadd.f32 %v3998_v57, %v569_v59  ;;  %v401_v27 = vpop.f32.mrf.mxu1 }
 0x116   :  { %v645_v1 = vmax.f32 %v609_v48, 0.0  ;;  %2956 = vmatmul.msk.bf16.gmra.mxu2 %vm178_vm1, %v3849_v5  ;;  %3028 = vmatmul.msk.bf16.gmra.mxu0 %vm812_vm2, %v4053_v60  ;;  %v389_v5 = vadd.f32 %v4064_v11, %v4051_v41 }
 0x117   :  { %2936 = vmatmul.msk.bf16.gmra.mxu1 %vm178_vm1, %v3867_v10 }
 0x118   :  { %v681_v16 = vpack.c.bf16 %v645_v1, %v645_v1  ;;  %v3604_v1 = vld [vmem:[%s4914_s0 + $0x98] sm:$0xff] }
 0x119   :  { %v498_v30 = vpop.f32.mrf.mxu2 }
 0x11a   :  { %v760_v4 = vunpack.c.l.b16 %v681_v16  ;;  %v570_v6 = vadd.f32 %v498_v30, %v387_v62  ;;  %v3609_v16 = vld [vmem:[%s4916_s3 + $0x20] sm:$0xff] }
 0x11b   :  { %v4113_v13 = vpop.f32.mrf.mxu0  ;;  %990 = vmatpush.bf16.msrb.mxu3 %v3609_v16 }
 0x11c   :  { %v4115_v20 = vpack.c.b16 %v760_v4, %v759_v3  ;;  %v610_v55 = vadd.f32 %v3998_v57, %v570_v6  ;;  %v403_v36 = vpop.f32.mrf.mxu1  ;;  %v402_v6 = vadd.f32 %v401_v27, %v4102_v61 }
 0x11d   :  { %v404_v61 = vadd.f32 %v403_v36, %v4113_v13 }
 0x11e   :  { %2977 = vmatmul.msk.bf16.gmra.mxu3 %vm812_vm2, %v4115_v20  ;;  %v646_v18 = vmax.f32 %v610_v55, 0.0 }
 0x120   :  { %v682_v51 = vpack.c.bf16 %v646_v18, %v646_v18 }
 0x121   :  { %v500_v15 = vpop.f32.mrf.mxu2 }
 0x122   :  { %v571_v45 = vadd.f32 %v500_v15, %v389_v5  ;;  %v761_v33 = vunpack.c.l.b16 %v682_v51 }
 0x123   :  { %v4122_v46 = vpop.f32.mrf.mxu0 }
 0x124   :  { %v611_v25 = vadd.f32 %v3998_v57, %v571_v45 }
 0x126   :  { %v647_v0 = vmax.f32 %v611_v25, 0.0  ;;  %2957 = vmatmul.msk.bf16.gmra.mxu2 %vm178_vm1, %v3867_v10  ;;  %3029 = vmatmul.msk.bf16.gmra.mxu0 %vm812_vm2, %v4076_v32  ;;  %v394_v10 = vadd.f32 %v393_v56, %v4074_v29  ;;  %v406_v56 = vpop.f32.mrf.mxu1 }
 0x127   :  { %2972 = vmatmul.msk.bf16.vlgmr.msrb.gmra.mxu1 %vm812_vm2, %v4062_v9 }
 0x128   :  { %v683_v41 = vpack.c.bf16 %v647_v0, %v647_v0 }
 0x129   :  { %v503_v11 = vpop.f32.mrf.mxu2 }
 0x12a   :  { %v762_v34 = vunpack.c.l.b16 %v683_v41  ;;  %v572_v39 = vadd.f32 %v503_v11, %v392_v26 }
 0x12b   :  { %v4132_v23 = vpop.f32.mrf.mxu0 }
 0x12c   :  { %v4134_v7 = vpack.c.b16 %v762_v34, %v761_v33  ;;  %v612_v50 = vadd.f32 %v3998_v57, %v572_v39  ;;  %v407_v39 = vadd.f32 %v406_v56, %v4122_v46 }
 0x12e   :  { %2978 = vmatmul.msk.bf16.gmra.mxu3 %vm812_vm2, %v4134_v7  ;;  %v648_v42 = vmax.f32 %v612_v50, 0.0  ;;  %v408_v3 = vpop.f32.mrf.mxu1 }
 0x12f   :  { %v409_v46 = vadd.f32 %v408_v3, %v4132_v23 }
 0x130   :  { %v684_v47 = vpack.c.bf16 %v648_v42, %v648_v42 }
 0x131   :  { %v505_v37 = vpop.f32.mrf.mxu2 }
 0x132   :  { %v573_v9 = vadd.f32 %v505_v37, %v394_v10  ;;  %v763_v8 = vunpack.c.l.b16 %v684_v47 }
 0x133   :  { %v4140_v58 = vpop.f32.mrf.mxu0 }
 0x134   :  { %v613_v44 = vadd.f32 %v3998_v57, %v573_v9 }
 0x136   :  { %v649_v49 = vmax.f32 %v613_v44, 0.0  ;;  %2958 = vmatmul.msk.bf16.gmra.mxu2 %vm178_vm1, %v3879_v12  ;;  %3030 = vmatmul.msk.bf16.gmra.mxu0 %vm812_vm2, %v4095_v53  ;;  %v399_v12 = vadd.f32 %v398_v14, %v4093_v52  ;;  %v411_v51 = vpop.f32.mrf.mxu1 }
 0x138   :  { %v685_v2 = vpack.c.bf16 %v649_v49, %v649_v49 }
 0x139   :  { %v508_v29 = vpop.f32.mrf.mxu2 }
 0x13a   :  { %v764_v19 = vunpack.c.l.b16 %v685_v2  ;;  %v574_v40 = vadd.f32 %v508_v29, %v397_v43 }
 0x13b   :  { %v4148_v59 = vpop.f32.mrf.mxu0 }
 0x13c   :  { %v4150_v48 = vpack.c.b16 %v764_v19, %v763_v8  ;;  %v614_v22 = vadd.f32 %v3998_v57, %v574_v40 }
 0x13e   :  { %2979 = vmatmul.msk.bf16.gmra.mxu3 %vm812_vm2, %v4150_v48  ;;  %v650_v62 = vmax.f32 %v614_v22, 0.0  ;;  %v413_v37 = vpop.f32.mrf.mxu1 }
 0x140   :  { %v686_v52 = vpack.c.bf16 %v650_v62, %v650_v62 }
 0x141   :  { %v510_v54 = vpop.f32.mrf.mxu2 }
 0x142   :  { %v575_v63 = vadd.f32 %v510_v54, %v399_v12  ;;  %v765_v15 = vunpack.c.l.b16 %v686_v52  ;;  %v412_v12 = vadd.f32 %v411_v51, %v4140_v58  ;;  %v414_v58 = vadd.f32 %v413_v37, %v4148_v59 }
 0x143   :  { %v4162_v30 = vpop.f32.mrf.mxu0 }
 0x144   :  { %v615_v4 = vadd.f32 %v3998_v57, %v575_v63 }
 0x146   :  { %v651_v14 = vmax.f32 %v615_v4, 0.0  ;;  %2959 = vmatmul.msk.bf16.gmra.mxu2 %vm178_vm1, %v3604_v1  ;;  %3031 = vmatmul.msk.bf16.gmra.mxu0 %vm812_vm2, %v4115_v20  ;;  %v416_v56 = vpop.f32.mrf.mxu1 }
 0x148   :  { %v687_v55 = vpack.c.bf16 %v651_v14, %v651_v14 }
 0x149   :  { %v513_v5 = vpop.f32.mrf.mxu2 }
 0x14a   :  { %v766_v18 = vunpack.c.l.b16 %v687_v55  ;;  %v576_v45 = vadd.f32 %v513_v5, %v402_v6 }
 0x14b   :  { %v4169_v25 = vpop.f32.mrf.mxu0 }
 0x14c   :  { %v4171_v26 = vpack.c.b16 %v766_v18, %v765_v15  ;;  %v616_v0 = vadd.f32 %v3998_v57, %v576_v45 }
 0x14e   :  { %2980 = vmatmul.msk.bf16.gmra.mxu3 %vm812_vm2, %v4171_v26  ;;  %v652_v41 = vmax.f32 %v616_v0, 0.0  ;;  %v418_v52 = vpop.f32.mrf.mxu1 }
 0x150   :  { %v688_v50 = vpack.c.bf16 %v652_v41, %v652_v41 }
 0x151   :  { %v515_v27 = vpop.f32.mrf.mxu2 }
 0x152   :  { %v577_v11 = vadd.f32 %v515_v27, %v404_v61  ;;  %v767_v44 = vunpack.c.l.b16 %v688_v50  ;;  %v417_v61 = vadd.f32 %v416_v56, %v4162_v30  ;;  %v419_v30 = vadd.f32 %v418_v52, %v4169_v25 }
 0x153   :  { %v4177_v33 = vpop.f32.mrf.mxu0 }
 0x154   :  { %v617_v34 = vadd.f32 %v3998_v57, %v577_v11 }
 0x156   :  { %v653_v10 = vmax.f32 %v617_v34, 0.0  ;;  %3032 = vmatmul.msk.bf16.gmra.mxu0 %vm812_vm2, %v4134_v7  ;;  %v421_v27 = vpop.f32.mrf.mxu1 }
 0x158   :  { %v689_v42 = vpack.c.bf16 %v653_v10, %v653_v10 }
 0x159   :  { %v518_v9 = vpop.f32.mrf.mxu2 }
 0x15a   :  { %v768_v43 = vunpack.c.l.b16 %v689_v42  ;;  %v578_v13 = vadd.f32 %v518_v9, %v407_v39 }
 0x15b   :  { %v4183_v36 = vpop.f32.mrf.mxu0 }
 0x15c   :  { %v4185_v47 = vpack.c.b16 %v768_v43, %v767_v44  ;;  %v618_v49 = vadd.f32 %v3998_v57, %v578_v13 }
 0x15e   :  { %2981 = vmatmul.msk.bf16.gmra.mxu3 %vm812_vm2, %v4185_v47  ;;  %v654_v8 = vmax.f32 %v618_v49, 0.0  ;;  %v423_v43 = vpop.f32.mrf.mxu1 }
 0x160   :  { %v690_v54 = vpack.c.bf16 %v654_v8, %v654_v8 }
 0x161   :  { %v520_v2 = vpop.f32.mrf.mxu2  ;;  %v4191_v29 = vpop.f32.mrf.mxu3 }
 0x162   :  { %v579_v19 = vadd.f32 %v520_v2, %v409_v46  ;;  %v769_v16 = vunpack.c.l.b16 %v690_v54 }
 0x163   :  { %v4193_v40 = vpop.f32.mrf.mxu0 }
 0x164   :  { %v619_v22 = vadd.f32 %v3998_v57, %v579_v19  ;;  %v422_v19 = vadd.f32 %v421_v27, %v4177_v33  ;;  %v424_v33 = vadd.f32 %v423_v43, %v4183_v36 }
 0x166   :  { %v655_v62 = vmax.f32 %v619_v22, 0.0  ;;  %3033 = vmatmul.msk.bf16.gmra.mxu0 %vm812_vm2, %v4150_v48 }
 0x168   :  { %v691_v63 = vpack.c.bf16 %v655_v62, %v655_v62 }
 0x169   :  { %v523_v1 = vpop.f32.mrf.mxu2  ;;  %v4199_v23 = vpop.f32.mrf.mxu3 }
 0x16a   :  { %v770_v3 = vunpack.c.l.b16 %v691_v63  ;;  %v580_v4 = vadd.f32 %v523_v1, %v412_v12  ;;  %v426_v63 = vpop.f32.mrf.mxu1 }
 0x16b   :  { %v4201_v6 = vpop.f32.mrf.mxu0 }
 0x16c   :  { %v4203_v14 = vpack.c.b16 %v770_v3, %v769_v16  ;;  %v620_v55 = vadd.f32 %v3998_v57, %v580_v4 }
 0x16e   :  { %2982 = vmatmul.msk.bf16.gmra.mxu3 %vm812_vm2, %v4203_v14  ;;  %v656_v18 = vmax.f32 %v620_v55, 0.0 }
 0x170   :  { %v692_v41 = vpack.c.bf16 %v656_v18, %v656_v18 }
 0x171   :  { %v525_v5 = vpop.f32.mrf.mxu2  ;;  %v4209_v15 = vpop.f32.mrf.mxu3 }
 0x172   :  { %v581_v45 = vadd.f32 %v525_v5, %v414_v58  ;;  %v771_v50 = vunpack.c.l.b16 %v692_v41 }
 0x173   :  { %v4211_v51 = vpop.f32.mrf.mxu0 }
 0x174   :  { %v621_v0 = vadd.f32 %v3998_v57, %v581_v45 }
 0x176   :  { %v657_v11 = vmax.f32 %v621_v0, 0.0  ;;  %3034 = vmatmul.msk.bf16.gmra.mxu0 %vm812_vm2, %v4171_v26 }
 0x178   :  { %v693_v34 = vpack.c.bf16 %v657_v11, %v657_v11  ;;  %v427_v11 = vadd.f32 %v426_v63, %v4193_v40 }
 0x179   :  { %v528_v39 = vpop.f32.mrf.mxu2  ;;  %v4217_v59 = vpop.f32.mrf.mxu3 }
 0x17a   :  { %v772_v10 = vunpack.c.l.b16 %v693_v34  ;;  %v582_v37 = vadd.f32 %v528_v39, %v417_v61  ;;  %v428_v61 = vpop.f32.mrf.mxu1 }
 0x17b   :  { %v4219_v42 = vpop.f32.mrf.mxu0 }
 0x17c   :  { %v4221_v9 = vpack.c.b16 %v772_v10, %v771_v50  ;;  %v622_v44 = vadd.f32 %v3998_v57, %v582_v37 }
 0x17e   :  { %2983 = vmatmul.msk.bf16.gmra.mxu3 %vm812_vm2, %v4221_v9  ;;  %v658_v46 = vmax.f32 %v622_v44, 0.0 }
 0x180   :  { %v694_v22 = vpack.c.bf16 %v658_v46, %v658_v46 }
 0x181   :  { %v530_v13 = vpop.f32.mrf.mxu2  ;;  %v4227_v49 = vpop.f32.mrf.mxu3 }
 0x182   :  { %v583_v2 = vadd.f32 %v530_v13, %v419_v30  ;;  %v773_v1 = vunpack.c.l.b16 %v694_v22  ;;  %v431_v46 = vpop.f32.mrf.mxu1 }
 0x183   :  { %v4229_v56 = vpop.f32.mrf.mxu0 }
 0x184   :  { %v623_v8 = vadd.f32 %v3998_v57, %v583_v2  ;;  %v429_v2 = vadd.f32 %v428_v61, %v4201_v6 }
 0x186   :  { %v659_v12 = vmax.f32 %v623_v8, 0.0  ;;  %3035 = vmatmul.msk.bf16.gmra.mxu0 %vm812_vm2, %v4185_v47 }
 0x188   :  { %v695_v54 = vpack.c.bf16 %v659_v12, %v659_v12 }
 0x189   :  { %v533_v62 = vpop.f32.mrf.mxu2  ;;  %v4235_v25 = vpop.f32.mrf.mxu3 }
 0x18a   :  { %v774_v16 = vunpack.c.l.b16 %v695_v54  ;;  %v584_v3 = vadd.f32 %v533_v62, %v422_v19 }
 0x18b   :  { %v4237_v4 = vpop.f32.mrf.mxu0 }
 0x18c   :  { %v4239_v52 = vpack.c.b16 %v774_v16, %v773_v1  ;;  %v624_v55 = vadd.f32 %v3998_v57, %v584_v3  ;;  %v432_v16 = vadd.f32 %v431_v46, %v3925_v21  ;;  %v433_v3 = vpop.f32.mrf.mxu1 }
 0x18d   :  { %v434_v21 = vadd.f32 %v433_v3, %v3931_v24 }
 0x18e   :  { %2984 = vmatmul.msk.bf16.gmra.mxu3 %vm812_vm2, %v4239_v52  ;;  %v660_v18 = vmax.f32 %v624_v55, 0.0 }
 0x190   :  { %v696_v34 = vpack.c.bf16 %v660_v18, %v660_v18 }
 0x191   :  { %v535_v58 = vpop.f32.mrf.mxu2  ;;  %v4245_v5 = vpop.f32.mrf.mxu3 }
 0x192   :  { %v585_v45 = vadd.f32 %v535_v58, %v424_v33  ;;  %v775_v37 = vunpack.c.l.b16 %v696_v34 }
 0x193   :  { %v1108_v0 = vpop.f32.mrf.mxu0 }
 0x194   :  { %v625_v27 = vadd.f32 %v3998_v57, %v585_v45  ;;  %v4249_v41 = vadd.f32 %v1108_v0, %v4191_v29 }
 0x196   :  { %v661_v39 = vmax.f32 %v625_v27, 0.0  ;;  %3036 = vmatmul.msk.bf16.gmra.mxu0 %vm812_vm2, %v4203_v14 }
 0x198   :  { %v697_v36 = vpack.c.bf16 %v661_v39, %v661_v39 }
 0x199   :  { %v538_v50 = vpop.f32.mrf.mxu2  ;;  %v4254_v10 = vpop.f32.mrf.mxu3 }
 0x19a   :  { %v776_v44 = vunpack.c.l.b16 %v697_v36  ;;  %v586_v30 = vadd.f32 %v538_v50, %v427_v11  ;;  %v436_v50 = vpop.f32.mrf.mxu1 }
 0x19b   :  { %v1110_v43 = vpop.f32.mrf.mxu0  ;;  %v437_v46 = vadd.f32 %v436_v50, %v3939_v28 }
 0x19c   :  { %v4256_v13 = vpack.c.b16 %v776_v44, %v775_v37  ;;  %v4259_v29 = vadd.f32 %v1110_v43, %v4199_v23  ;;  %v626_v40 = vadd.f32 %v3998_v57, %v586_v30 }
 0x19e   :  { %2985 = vmatmul.msk.bf16.gmra.mxu3 %vm812_vm2, %v4256_v13  ;;  %v662_v22 = vmax.f32 %v626_v40, 0.0 }
 0x1a0   :  { %v698_v23 = vpack.c.bf16 %v662_v22, %v662_v22 }
 0x1a1   :  { %v540_v8 = vpop.f32.mrf.mxu2  ;;  %v4265_v19 = vpop.f32.mrf.mxu3 }
 0x1a2   :  { %v587_v12 = vadd.f32 %v540_v8, %v429_v2  ;;  %v777_v58 = vunpack.c.l.b16 %v698_v23  ;;  %v3614_v23 = vld [vmem:[%s4917_s5 + $0x18] sm:$0xff] }
 0x1a3   :  { %v1113_v54 = vpop.f32.mrf.mxu0  ;;  %1436 = vmatpush.bf16.msra.mxu2 %v3614_v23 }
 0x1a4   :  { %v627_v62 = vadd.f32 %v3998_v57, %v587_v12  ;;  %v4269_v63 = vadd.f32 %v1113_v54, %v4209_v15 }
 0x1a6   :  { %v663_v1 = vmax.f32 %v627_v62, 0.0  ;;  %3037 = vmatmul.msk.bf16.gmra.mxu0 %vm812_vm2, %v4221_v9 }
 0x1a8   :  { %v699_v6 = vpack.c.bf16 %v663_v1, %v663_v1  ;;  %v438_v1 = vpop.f32.mrf.mxu1 }
 0x1a9   :  { %v543_v55 = vpop.f32.mrf.mxu2  ;;  %v4274_v33 = vpop.f32.mrf.mxu3 }
 0x1aa   :  { %v778_v18 = vunpack.c.l.b16 %v699_v6  ;;  %v588_v45 = vadd.f32 %v543_v55, %v432_v16  ;;  %v439_v16 = vadd.f32 %v438_v1, %v3941_v31 }
 0x1ab   :  { %v1115_v0 = vpop.f32.mrf.mxu0 }
 0x1ac   :  { %v4276_v61 = vpack.c.b16 %v778_v18, %v777_v58  ;;  %v4279_v15 = vadd.f32 %v1115_v0, %v4217_v59  ;;  %v628_v27 = vadd.f32 %v3998_v57, %v588_v45 }
 0x1ae   :  { %2986 = vmatmul.msk.bf16.gmra.mxu3 %vm812_vm2, %v4276_v61  ;;  %v664_v39 = vmax.f32 %v628_v27, 0.0 }
 0x1b0   :  { %v700_v59 = vpack.c.bf16 %v664_v39, %v664_v39 }
 0x1b1   :  { %v545_v11 = vpop.f32.mrf.mxu2  ;;  %v4285_v34 = vpop.f32.mrf.mxu3 }
 0x1b2   :  { %v589_v36 = vadd.f32 %v545_v11, %v434_v21  ;;  %v779_v8 = vunpack.c.l.b16 %v700_v59 }
 0x1b3   :  { %v1118_v37 = vpop.f32.mrf.mxu0 }
 0x1b4   :  { %v629_v44 = vadd.f32 %v3998_v57, %v589_v36  ;;  %v4289_v30 = vadd.f32 %v1118_v37, %v4227_v49 }
 0x1b6   :  { %v665_v43 = vmax.f32 %v629_v44, 0.0  ;;  %3038 = vmatmul.msk.bf16.gmra.mxu0 %vm812_vm2, %v4239_v52 }
 0x1b8   :  { %v701_v24 = vpack.c.bf16 %v665_v43, %v665_v43 }
 0x1b9   :  { %v548_v40 = vpop.f32.mrf.mxu2  ;;  %v4294_v2 = vpop.f32.mrf.mxu3 }
 0x1ba   :  { %v780_v22 = vunpack.c.l.b16 %v701_v24  ;;  %v590_v12 = vadd.f32 %v548_v40, %v437_v46  ;;  %v441_v46 = vpop.f32.mrf.mxu1 }
 0x1bb   :  { %v1120_v54 = vpop.f32.mrf.mxu0 }
 0x1bc   :  { %v4296_v62 = vpack.c.b16 %v780_v22, %v779_v8  ;;  %v4299_v49 = vadd.f32 %v1120_v54, %v4235_v25  ;;  %v630_v28 = vadd.f32 %v3998_v57, %v590_v12 }
 0x1be   :  { %2987 = vmatmul.msk.bf16.gmra.mxu3 %vm812_vm2, %v4296_v62  ;;  %v666_v55 = vmax.f32 %v630_v28, 0.0 }
 0x1c0   :  { %v702_v0 = vpack.c.bf16 %v666_v55, %v666_v55 }
 0x1c1   :  { %v550_v3 = vpop.f32.mrf.mxu2  ;;  %v4308_v6 = vpop.f32.mrf.mxu3 }
 0x1c2   :  { %v591_v58 = vadd.f32 %v550_v3, %v439_v16  ;;  %v781_v31 = vunpack.c.l.b16 %v702_v0  ;;  %v443_v22 = vpop.f32.mrf.mxu1 }
 0x1c3   :  { %v1123_v25 = vpop.f32.mrf.mxu0  ;;  %v444_v23 = vadd.f32 %v443_v22, %v3955_v38 }
 0x1c4   :  { %v631_v18 = vadd.f32 %v3998_v57, %v591_v58  ;;  %v4312_v45 = vadd.f32 %v1123_v25, %v4245_v5 }
 0x1c6   :  { %v667_v27 = vmax.f32 %v631_v18, 0.0  ;;  %3039 = vmatmul.msk.bf16.gmra.mxu0 %vm812_vm2, %v4256_v13 }
 0x1c8   :  { %v703_v21 = vpack.c.bf16 %v667_v27, %v667_v27  ;;  %v3613_v27 = vld [vmem:[%s4917_s5 + $0x10] sm:$0xff] }
 0x1c9   :  { %v4316_v11 = vpop.f32.mrf.mxu3  ;;  %v553_v24 = vpop.f32.mrf.mxu2  ;;  %1437 = vmatpush.bf16.msra.mxu2 %v3613_v27 }
 0x1ca   :  { %v782_v39 = vunpack.c.l.b16 %v703_v21 }
 0x1cb   :  { %v1125_v36 = vpop.f32.mrf.mxu0 }
 0x1cc   :  { %v4318_v50 = vpack.c.b16 %v782_v39, %v781_v31  ;;  %v4321_v37 = vadd.f32 %v1125_v36, %v4254_v10 }
 0x1ce   :  { %2988 = vmatmul.msk.bf16.gmra.mxu3 %vm812_vm2, %v4318_v50 }
 0x1d1   :  { %v4325_v5 = vpop.f32.mrf.mxu3  ;;  %v555_v54 = vpop.f32.mrf.mxu2 }
 0x1d2   :  { %v593_v1 = vadd.f32 %v555_v54, %v444_v23 }
 0x1d3   :  { %v4327_v44 = vpop.f32.mrf.mxu0 }
 0x1d4   :  { %v633_v55 = vadd.f32 %v3998_v57, %v593_v1 }
 0x1d6   :  { %3040 = vmatmul.msk.bf16.gmra.mxu0 %vm812_vm2, %v4276_v61  ;;  %v669_v25 = vmax.f32 %v633_v55, 0.0 }
 0x1d9   :  { %v4331_v59 = vpop.f32.mrf.mxu3 }
 0x1db   :  { %v4333_v43 = vpop.f32.mrf.mxu0 }
 0x1de   :  { %3001 = vmatmul.msk.bf16.vlgmr.msrb.gmra.mxu3 %vm812_vm2, %v4022_v17  ;;  %v442_v17 = vadd.f32 %v441_v46, %v3949_v35  ;;  %v705_v35 = vpack.c.bf16 %v669_v25, %v669_v25 }
 0x1e0   :  { %v592_v16 = vadd.f32 %v553_v24, %v442_v17  ;;  %v966_v21 = vunpack.c.l.b16 %v705_v35 }
 0x1e1   :  { %v4337_v10 = vpop.f32.mrf.mxu3 }
 0x1e2   :  { %v632_v58 = vadd.f32 %v3998_v57, %v592_v16 }
 0x1e3   :  { %v4339_v40 = vpop.f32.mrf.mxu0 }
 0x1e4   :  { %v668_v18 = vmax.f32 %v632_v58, 0.0 }
 0x1e6   :  { %3041 = vmatmul.msk.bf16.gmra.mxu0 %vm812_vm2, %v4296_v62  ;;  %v704_v0 = vpack.c.bf16 %v668_v18, %v668_v18 }
 0x1e8   :  { %v965_v31 = vunpack.c.l.b16 %v704_v0 }
 0x1e9   :  { %v4343_v8 = vpop.f32.mrf.mxu3 }
 0x1ea   :  { %v4372_v36 = vpack.c.b16 %v966_v21, %v965_v31 }
 0x1eb   :  { %v4345_v12 = vpop.f32.mrf.mxu0 }
 0x1ee   :  { %3002 = vmatmul.msk.bf16.gmra.mxu3 %vm812_vm2, %v4053_v60 }
 0x1f1   :  { %v4351_v28 = vpop.f32.mrf.mxu3 }
 0x1f3   :  { %v4353_v3 = vpop.f32.mrf.mxu0 }
 0x1f6   :  { %3042 = vmatmul.msk.bf16.gmra.mxu0 %vm812_vm2, %v4318_v50 }
 0x1f9   :  { %v4359_v38 = vpop.f32.mrf.mxu3 }
 0x1fb   :  { %v4361_v60 = vpop.f32.mrf.mxu0 }
 0x1fe   :  { %3003 = vmatmul.msk.bf16.gmra.mxu3 %vm812_vm2, %v4076_v32 }
 0x201   :  { %v4368_v57 = vpop.f32.mrf.mxu3 }
 0x203   :  { %v4370_v39 = vpop.f32.mrf.mxu0 }
 0x206   :  { %3043 = vmatmul.msk.bf16.gmra.mxu0 %vm812_vm2, %v4372_v36 }
 0x209   :  { %v4376_v46 = vpop.f32.mrf.mxu3 }
 0x20b   :  { %v4378_v24 = vpop.f32.mrf.mxu0 }
 0x20e   :  { %3004 = vmatmul.msk.bf16.gmra.mxu3 %vm812_vm2, %v4095_v53 }
 0x211   :  { %v4382_v32 = vpop.f32.mrf.mxu3 }
 0x213   :  { %v4384_v22 = vpop.f32.mrf.mxu0 }
 0x219   :  { %v4386_v54 = vpop.f32.mrf.mxu3 }
 0x21a   :  { %4927 = vst [vmem:[#allocation2_spill] sm:$0xff] %v4386_v54 }
 0x21b   :  { %v4388_v23 = vpop.f32.mrf.mxu0 }
 0x21e   :  { %3005 = vmatmul.msk.bf16.gmra.mxu3 %vm812_vm2, %v4115_v20 }
 0x221   :  { %v4392_v17 = vpop.f32.mrf.mxu3 }
 0x222   :  { %4928 = vst [vmem:[#allocation3_spill] sm:$0xff] %v4392_v17  ;;  %v873_v17 = vpop.f32.mrf.mxu1 }
 0x223   :  { %v4394_v1 = vpop.f32.mrf.mxu0 }
 0x229   :  { %v4396_v16 = vpop.f32.mrf.mxu3 }
 0x22a   :  { %4929 = vst [vmem:[#allocation4_spill] sm:$0xff] %v4396_v16 }
 0x22b   :  { %v4398_v55 = vpop.f32.mrf.mxu0 }
 0x22e   :  { %3006 = vmatmul.msk.bf16.gmra.mxu3 %vm812_vm2, %v4134_v7  ;;  %v3612_v7 = vld [vmem:[%s4917_s5 + $0x8] sm:$0xff] }
 0x22f   :  { %1438 = vmatpush.bf16.msra.mxu2 %v3612_v7 }
 0x231   :  { %v4402_v53 = vpop.f32.mrf.mxu3 }
 0x232   :  { %4930 = vst [vmem:[#allocation5_spill] sm:$0xff] %v4402_v53  ;;  %v4451_v53 = vld [vmem:[%s4918_s4] ss:$0 sm:$0xff] }
 0x233   :  { %v4404_v58 = vpop.f32.mrf.mxu0 }
 0x239   :  { %v4406_v25 = vpop.f32.mrf.mxu3 }
 0x23a   :  { %4931 = vst [vmem:[#allocation6_spill] sm:$0xff] %v4406_v25 }
 0x23b   :  { %v4408_v18 = vpop.f32.mrf.mxu0 }
 0x23e   :  { %3007 = vmatmul.msk.bf16.gmra.mxu3 %vm812_vm2, %v4150_v48  ;;  %v3611_v48 = vld [vmem:[%s4917_s5] sm:$0xff] }
 0x23f   :  { %1439 = vmatpush.bf16.msra.mxu2 %v3611_v48  ;;  %v3616_v48 = vld [vmem:[%s4917_s5 + $0x28] sm:$0xff] }
 0x241   :  { %v4412_v20 = vpop.f32.mrf.mxu3 }
 0x242   :  { %4932 = vst [vmem:[#allocation7_spill] sm:$0xff] %v4412_v20 }
 0x243   :  { %v4414_v35 = vpop.f32.mrf.mxu0 }
 0x244   :  { %4933 = vst [vmem:[#allocation8_spill] sm:$0xff] %v4414_v35 }
 0x249   :  { %v4416_v0 = vpop.f32.mrf.mxu3 }
 0x24a   :  { %4934 = vst [vmem:[#allocation9_spill] sm:$0xff] %v4416_v0  ;;  %v3618_v0 = vld [vmem:[%s4917_s5 + $0x38] sm:$0xff] }
 0x24b   :  { %v4421_v27 = vpop.f32.mrf.mxu0  ;;  %1390 = vmatpush.bf16.msra.mxu1 %v3618_v0 }
 0x24c   :  { %4935 = vst [vmem:[#allocation10_spill] sm:$0xff] %v4421_v27 }
 0x24e   :  { %3008 = vmatmul.msk.bf16.gmra.mxu3 %vm812_vm2, %v4171_v26  ;;  %v3617_v26 = vld [vmem:[%s4917_s5 + $0x30] sm:$0xff] }
 0x24f   :  { %1391 = vmatpush.bf16.msra.mxu1 %v3617_v26  ;;  %v3615_v26 = vld [vmem:[%s4917_s5 + $0x20] sm:$0xff] }
 0x251   :  { %v4425_v21 = vpop.f32.mrf.mxu3 }
 0x253   :  { %v4430_v31 = vpop.f32.mrf.mxu0  ;;  %1392 = vmatpush.bf16.msra.mxu1 %v3616_v48  ;;  %v3622_v48 = vld [vmem:[%s4917_s5 + $0x58] sm:$0xff] }
 0x254   :  { %4936 = vst [vmem:[#allocation11_spill] sm:$0xff] %v4430_v31  ;;  %v3621_v31 = vld [vmem:[%s4917_s5 + $0x50] sm:$0xff] }
 0x257   :  { %1393 = vmatpush.bf16.msra.mxu1 %v3615_v26 }
 0x259   :  { %v4435_v20 = vpop.f32.mrf.mxu3 }
 0x25b   :  { %v4440_v7 = vpop.f32.mrf.mxu0  ;;  %1491 = vmatpush.bf16.msrb.mxu1 %v3622_v48 }
 0x25c   :  { %4937 = vst [vmem:[#allocation12_spill] sm:$0xff] %v4440_v7 }
 0x25e   :  { %3009 = vmatmul.msk.bf16.gmra.mxu3 %vm812_vm2, %v4185_v47 }
 0x25f   :  { %1492 = vmatpush.bf16.msrb.mxu1 %v3621_v31 }
 0x261   :  { %v992_v25 = vpop.f32.mrf.mxu3 }
 0x262   :  { %v1188_v0 = vadd.f32 %v4211_v51, %v992_v25 }
 0x263   :  { %v4456_v7 = vpop.f32.mrf.mxu0 }
 0x264   :  { %4938 = vst [vmem:[#allocation13_spill] sm:$0xff] %v4456_v7  ;;  %v1228_v47 = vadd.f32 %v4451_v53, %v1188_v0 }
 0x266   :  { %v1264_v25 = vmax.f32 %v1228_v47, 0.0  ;;  %v3620_v47 = vld [vmem:[%s4917_s5 + $0x48] sm:$0xff] }
 0x267   :  { %1493 = vmatpush.bf16.msrb.mxu1 %v3620_v47 }
 0x268   :  { %v1300_v0 = vpack.c.bf16 %v1264_v25, %v1264_v25  ;;  %v875_v25 = vpop.f32.mrf.mxu1 }
 0x269   :  { %v994_v51 = vpop.f32.mrf.mxu3 }
 0x26a   :  { %v1189_v16 = vadd.f32 %v4219_v42, %v994_v51  ;;  %v1104_v42 = vadd.f32 %v4229_v56, %v873_v17  ;;  %v1402_v54 = vunpack.c.l.b16 %v1300_v0  ;;  %v3626_v56 = vld [vmem:[%s4917_s5 + $0x78] sm:$0xff]  ;;  %v1106_v17 = vadd.f32 %v4237_v4, %v875_v25  ;;  %v3624_v4 = vld [vmem:[%s4917_s5 + $0x68] sm:$0xff] }
 0x26b   :  { %v4466_v27 = vpop.f32.mrf.mxu0  ;;  %1548 = vmatpush.bf16.msrb.mxu2 %v3626_v56  ;;  %v3623_v56 = vld [vmem:[%s4917_s5 + $0x60] sm:$0xff] }
 0x26c   :  { %4939 = vst [vmem:[#allocation14_spill] sm:$0xff] %v4466_v27  ;;  %v1229_v26 = vadd.f32 %v4451_v53, %v1189_v16  ;;  %v3619_v16 = vld [vmem:[%s4917_s5 + $0x40] sm:$0xff] }
 0x26d   :  { %1494 = vmatpush.bf16.msrb.mxu1 %v3619_v16 }
 0x26e   :  { %v1265_v7 = vmax.f32 %v1229_v26, 0.0  ;;  %3010 = vmatmul.msk.bf16.gmra.mxu3 %vm812_vm2, %v4203_v14 }
 0x270   :  { %v1301_v48 = vpack.c.bf16 %v1265_v7, %v1265_v7 }
 0x271   :  { %v997_v51 = vpop.f32.mrf.mxu3 }
 0x272   :  { %v1403_v35 = vunpack.c.l.b16 %v1301_v48  ;;  %v1190_v27 = vadd.f32 %v1104_v42, %v997_v51 }
 0x273   :  { %v4478_v31 = vpop.f32.mrf.mxu0 }
 0x274   :  { %v1404_v14 = vpack.c.b16 %v1403_v35, %v1402_v54  ;;  %v1230_v26 = vadd.f32 %v4451_v53, %v1190_v27  ;;  %v3625_v54 = vld [vmem:[%s4917_s5 + $0x70] sm:$0xff] }
 0x275   :  { %1549 = vmatpush.bf16.msrb.mxu2 %v3625_v54 }
 0x276   :  { %3085 = vmatmul.msk.bf16.vlgmr.msra.gmra.mxu2 %vm1382_vm3, %v1404_v14  ;;  %v1266_v0 = vmax.f32 %v1230_v26, 0.0 }
 0x278   :  { %v1302_v42 = vpack.c.bf16 %v1266_v0, %v1266_v0 }
 0x279   :  { %v999_v7 = vpop.f32.mrf.mxu3  ;;  %1550 = vmatpush.bf16.msrb.mxu2 %v3624_v4 }
 0x27a   :  { %v1191_v47 = vadd.f32 %v1106_v17, %v999_v7  ;;  %v1355_v14 = vunpack.c.l.b16 %v1302_v42 }
 0x27b   :  { %v4489_v35 = vpop.f32.mrf.mxu0 }
 0x27c   :  { %v1231_v27 = vadd.f32 %v4451_v53, %v1191_v47  ;;  %v3630_v47 = vld [vmem:[%s4917_s5 + $0x98] sm:$0xff] }
 0x27d   :  { %1551 = vmatpush.bf16.msrb.mxu2 %v3623_v56 }
 0x27e   :  { %v1267_v48 = vmax.f32 %v1231_v27, 0.0  ;;  %3011 = vmatmul.msk.bf16.gmra.mxu3 %vm812_vm2, %v4221_v9 }
 0x280   :  { %v1303_v51 = vpack.c.bf16 %v1267_v48, %v1267_v48 }
 0x281   :  { %v1002_v16 = vpop.f32.mrf.mxu3 }
 0x282   :  { %v1356_v25 = vunpack.c.l.b16 %v1303_v51  ;;  %v1192_v26 = vadd.f32 %v4249_v41, %v1002_v16 }
 0x283   :  { %v1183_v17 = vpop.f32.mrf.mxu0 }
 0x284   :  { %v1357_v7 = vpack.c.b16 %v1356_v25, %v1355_v14  ;;  %v1184_v0 = vadd.f32 %v1183_v17, %v4425_v21  ;;  %v1232_v9 = vadd.f32 %v4451_v53, %v1192_v26  ;;  %v3629_v21 = vld [vmem:[%s4917_s5 + $0x90] sm:$0xff] }
 0x286   :  { %3068 = vmatmul.msk.bf16.vlgmr.msra.gmra.mxu1 %vm1382_vm3, %v1357_v7  ;;  %v1262_v54 = vadd.f32 %v4451_v53, %v1184_v0  ;;  %v1268_v27 = vmax.f32 %v1232_v9, 0.0 }
 0x287   :  { %1605 = vmatpush.bf16.msra.mxu1 %v3630_v47 }
 0x288   :  { %v1298_v4 = vmax.f32 %v1262_v54, 0.0  ;;  %v1304_v14 = vpack.c.bf16 %v1268_v27, %v1268_v27 }
 0x289   :  { %v1004_v41 = vpop.f32.mrf.mxu3 }
 0x28a   :  { %v1193_v42 = vadd.f32 %v4259_v29, %v1004_v41  ;;  %v3628_v29 = vld [vmem:[%s4917_s5 + $0x88] sm:$0xff]  ;;  %v1334_v56 = vpack.c.bf16 %v1298_v4, %v1298_v4  ;;  %v1457_v9 = vunpack.c.l.b16 %v1304_v14  ;;  %v3627_v41 = vld [vmem:[%s4917_s5 + $0x80] sm:$0xff]  ;;  %v3634_v4 = vld [vmem:[%s4917_s5 + $0xb8] sm:$0xff] }
 0x28b   :  { %v1185_v48 = vpop.f32.mrf.mxu0  ;;  %1606 = vmatpush.bf16.msra.mxu1 %v3629_v21  ;;  %1662 = vmatpush.bf16.msra.mxu2 %v3634_v4  ;;  %v3633_v14 = vld [vmem:[%s4917_s5 + $0xb0] sm:$0xff] }
 0x28c   :  { %v1233_v51 = vadd.f32 %v4451_v53, %v1193_v42  ;;  %v1186_v16 = vadd.f32 %v1185_v48, %v4435_v20  ;;  %v2312_v27 = vunpack.c.l.b16 %v1334_v56  ;;  %v3632_v56 = vld [vmem:[%s4917_s5 + $0xa8] sm:$0xff] }
 0x28e   :  { %v1269_v25 = vmax.f32 %v1233_v51, 0.0  ;;  %v1263_v26 = vadd.f32 %v4451_v53, %v1186_v16  ;;  %3012 = vmatmul.msk.bf16.gmra.mxu3 %vm812_vm2, %v4239_v52 }
 0x28f   :  { %1607 = vmatpush.bf16.msra.mxu1 %v3628_v29  ;;  %1663 = vmatpush.bf16.msra.mxu2 %v3633_v14 }
 0x290   :  { %v1305_v17 = vpack.c.bf16 %v1269_v25, %v1269_v25  ;;  %v1299_v7 = vmax.f32 %v1263_v26, 0.0 }
 0x291   :  { %v1007_v0 = vpop.f32.mrf.mxu3 }
 0x292   :  { %v1458_v47 = vunpack.c.l.b16 %v1305_v17  ;;  %v1335_v20 = vpack.c.bf16 %v1299_v7, %v1299_v7  ;;  %v1194_v54 = vadd.f32 %v4269_v63, %v1007_v0 }
 0x293   :  { %1608 = vmatpush.bf16.msra.mxu1 %v3627_v41  ;;  %1664 = vmatpush.bf16.msra.mxu2 %v3632_v56 }
 0x294   :  { %v1459_v52 = vpack.c.b16 %v1458_v47, %v1457_v9  ;;  %v2313_v42 = vunpack.c.l.b16 %v1335_v20  ;;  %v1234_v48 = vadd.f32 %v4451_v53, %v1194_v54  ;;  %v3631_v47 = vld [vmem:[%s4917_s5 + $0xa0] sm:$0xff] }
 0x296   :  { %v4524_v21 = vpack.c.b16 %v2313_v42, %v2312_v27  ;;  %3110 = vmatmul.msk.bf16.vlgmr.msrb.gmra.mxu1 %vm1382_vm3, %v1459_v52  ;;  %v1270_v51 = vmax.f32 %v1234_v48, 0.0 }
 0x297   :  { %1665 = vmatpush.bf16.msra.mxu2 %v3631_v47 }
 0x298   :  { %v1306_v26 = vpack.c.bf16 %v1270_v51, %v1270_v51 }
 0x299   :  { %v1009_v63 = vpop.f32.mrf.mxu3 }
 0x29a   :  { %v1195_v16 = vadd.f32 %v4279_v15, %v1009_v63  ;;  %v1514_v15 = vunpack.c.l.b16 %v1306_v26  ;;  %v3636_v63 = vld [vmem:[%s4917_s5 + $0xc8] sm:$0xff]  ;;  %v3635_v26 = vld [vmem:[%s4917_s5 + $0xc0] sm:$0xff] }
 0x29c   :  { %v1235_v25 = vadd.f32 %v4451_v53, %v1195_v16 }
 0x29e   :  { %v1271_v29 = vmax.f32 %v1235_v25, 0.0  ;;  %3013 = vmatmul.msk.bf16.gmra.mxu3 %vm812_vm2, %v4256_v13  ;;  %v3638_v13 = vld [vmem:[%s4917_s5 + $0xd8] sm:$0xff] }
 0x29f   :  { %1719 = vmatpush.bf16.msrb.mxu1 %v3638_v13 }
 0x2a0   :  { %v1307_v17 = vpack.c.bf16 %v1271_v29, %v1271_v29 }
 0x2a1   :  { %v1012_v7 = vpop.f32.mrf.mxu3 }
 0x2a2   :  { %v1515_v0 = vunpack.c.l.b16 %v1307_v17  ;;  %v1196_v9 = vadd.f32 %v4289_v30, %v1012_v7  ;;  %v3637_v30 = vld [vmem:[%s4917_s5 + $0xd0] sm:$0xff] }
 0x2a3   :  { %1720 = vmatpush.bf16.msrb.mxu1 %v3637_v30  ;;  %v3639_v30 = vld [vmem:[%s4917_s5 + $0xe0] sm:$0xff] }
 0x2a4   :  { %v1516_v20 = vpack.c.b16 %v1515_v0, %v1514_v15  ;;  %v1236_v54 = vadd.f32 %v4451_v53, %v1196_v9 }
 0x2a6   :  { %3135 = vmatmul.msk.bf16.vlgmr.msrb.gmra.mxu2 %vm1382_vm3, %v1516_v20  ;;  %v1272_v27 = vmax.f32 %v1236_v54, 0.0  ;;  %v3640_v20 = vld [vmem:[%s4917_s5 + $0xe8] sm:$0xff]  ;;  %v1129_v54 = vadd.f32 %v4327_v44, %v4265_v19  ;;  %v3646_v19 = vld [vmem:[%s4917_s5 + $0x118] sm:$0xff]  ;;  %v1131_v44 = vadd.f32 %v4333_v43, %v4274_v33  ;;  %v1134_v43 = vadd.f32 %v4339_v40, %v4285_v34 }
 0x2a7   :  { %1721 = vmatpush.bf16.msrb.mxu1 %v3636_v63  ;;  %v3644_v33 = vld [vmem:[%s4917_s5 + $0x108] sm:$0xff]  ;;  %v3650_v34 = vld [vmem:[%s4917_s5 + $0x138] sm:$0xff]  ;;  %v1136_v40 = vadd.f32 %v4345_v12, %v4294_v2  ;;  %v1139_v12 = vadd.f32 %v4353_v3, %v4308_v6  ;;  %v1141_v3 = vadd.f32 %v4361_v60, %v4316_v11  ;;  %v1144_v11 = vadd.f32 %v4370_v39, %v4325_v5 }
 0x2a8   :  { %v1308_v48 = vpack.c.bf16 %v1272_v27, %v1272_v27  ;;  %v3648_v2 = vld [vmem:[%s4917_s5 + $0x128] sm:$0xff]  ;;  %v3654_v6 = vld [vmem:[%s4917_s5 + $0x158] sm:$0xff]  ;;  %v1146_v39 = vadd.f32 %v4378_v24, %v4331_v59  ;;  %v1149_v59 = vadd.f32 %v4384_v22, %v4337_v10  ;;  %v1151_v22 = vadd.f32 %v4388_v23, %v4343_v8 }
 0x2a9   :  { %v1014_v41 = vpop.f32.mrf.mxu3  ;;  %v3658_v5 = vld [vmem:[%s4917_s5 + $0x178] sm:$0xff]  ;;  %v1154_v8 = vadd.f32 %v4394_v1, %v4351_v28  ;;  %v1156_v1 = vadd.f32 %v4398_v55, %v4359_v38  ;;  %v3664_v38 = vld [vmem:[%s4917_s5 + $0x1a8] sm:$0xff]  ;;  %v1159_v55 = vadd.f32 %v4404_v58, %v4368_v57  ;;  %v1161_v58 = vadd.f32 %v4408_v18, %v4376_v46  ;;  %v4940_v46 = vld [vmem:[#allocation8_spill] sm:$0xff] }
 0x2aa   :  { %v1197_v52 = vadd.f32 %v4299_v49, %v1014_v41  ;;  %v1571_v49 = vunpack.c.l.b16 %v1308_v48  ;;  %v3662_v10 = vld [vmem:[%s4917_s5 + $0x198] sm:$0xff]  ;;  %v1164_v18 = vadd.f32 %v4940_v46, %v4382_v32 }
 0x2ab   :  { %1722 = vmatpush.bf16.msrb.mxu1 %v3635_v26  ;;  %v3666_v28 = vld [vmem:[%s4917_s5 + $0x1b8] sm:$0xff] }
 0x2ac   :  { %v1237_v42 = vadd.f32 %v4451_v53, %v1197_v52  ;;  %v3670_v57 = vld [vmem:[%s4917_s5 + $0x1d8] sm:$0xff] }
 0x2ad   :  { %v3674_v32 = vld [vmem:[%s4917_s5 + $0x1f8] sm:$0xff] }
 0x2ae   :  { %v1273_v4 = vmax.f32 %v1237_v42, 0.0  ;;  %3014 = vmatmul.msk.bf16.gmra.mxu3 %vm812_vm2, %v4276_v61  ;;  %v3642_v61 = vld [vmem:[%s4917_s5 + $0xf8] sm:$0xff] }
 0x2af   :  { %1776 = vmatpush.bf16.msrb.mxu2 %v3642_v61 }
 0x2b0   :  { %v1309_v51 = vpack.c.bf16 %v1273_v4, %v1273_v4 }
 0x2b1   :  { %v1017_v16 = vpop.f32.mrf.mxu3 }
 0x2b2   :  { %v1572_v14 = vunpack.c.l.b16 %v1309_v51  ;;  %v1198_v25 = vadd.f32 %v4312_v45, %v1017_v16  ;;  %v3641_v45 = vld [vmem:[%s4917_s5 + $0xf0] sm:$0xff] }
 0x2b3   :  { %1777 = vmatpush.bf16.msrb.mxu2 %v3641_v45  ;;  %v3645_v51 = vld [vmem:[%s4917_s5 + $0x110] sm:$0xff] }
 0x2b4   :  { %v1573_v29 = vpack.c.b16 %v1572_v14, %v1571_v49  ;;  %v1238_v56 = vadd.f32 %v4451_v53, %v1198_v25 }
 0x2b6   :  { %3160 = vmatmul.msk.bf16.vlgmr.msra.gmra.mxu1 %vm1382_vm3, %v1573_v29  ;;  %v1274_v7 = vmax.f32 %v1238_v56, 0.0 }
 0x2b7   :  { %1778 = vmatpush.bf16.msrb.mxu2 %v3640_v20  ;;  %1833 = vmatpush.bf16.msra.mxu1 %v3646_v19 }
 0x2b8   :  { %v1310_v9 = vpack.c.bf16 %v1274_v7, %v1274_v7 }
 0x2b9   :  { %v1019_v17 = vpop.f32.mrf.mxu3 }
 0x2ba   :  { %v1199_v15 = vadd.f32 %v4321_v37, %v1019_v17  ;;  %v1628_v41 = vunpack.c.l.b16 %v1310_v9  ;;  %v3643_v17 = vld [vmem:[%s4917_s5 + $0x100] sm:$0xff]  ;;  %v3649_v9 = vld [vmem:[%s4917_s5 + $0x130] sm:$0xff] }
 0x2bb   :  { %1779 = vmatpush.bf16.msrb.mxu2 %v3639_v30  ;;  %1834 = vmatpush.bf16.msra.mxu1 %v3645_v51  ;;  %v3647_v30 = vld [vmem:[%s4917_s5 + $0x120] sm:$0xff] }
 0x2bc   :  { %v1239_v0 = vadd.f32 %v4451_v53, %v1199_v15 }
 0x2be   :  { %v1275_v47 = vmax.f32 %v1239_v0, 0.0  ;;  %3015 = vmatmul.msk.bf16.gmra.mxu3 %vm812_vm2, %v4296_v62 }
 0x2bf   :  { %1835 = vmatpush.bf16.msra.mxu1 %v3644_v33 }
 0x2c0   :  { %v1311_v37 = vpack.c.bf16 %v1275_v47, %v1275_v47 }
 0x2c1   :  { %v1022_v13 = vpop.f32.mrf.mxu3 }
 0x2c2   :  { %v1629_v27 = vunpack.c.l.b16 %v1311_v37  ;;  %v1200_v52 = vadd.f32 %v1129_v54, %v1022_v13 }
 0x2c3   :  { %1836 = vmatpush.bf16.msra.mxu1 %v3643_v17 }
 0x2c4   :  { %v1630_v42 = vpack.c.b16 %v1629_v27, %v1628_v41  ;;  %v1240_v62 = vadd.f32 %v4451_v53, %v1200_v52 }
 0x2c6   :  { %3185 = vmatmul.msk.bf16.vlgmr.msra.gmra.mxu2 %vm1382_vm3, %v1630_v42  ;;  %v1276_v4 = vmax.f32 %v1240_v62, 0.0 }
 0x2c7   :  { %1890 = vmatpush.bf16.msra.mxu2 %v3650_v34 }
 0x2c8   :  { %v1312_v49 = vpack.c.bf16 %v1276_v4, %v1276_v4 }
 0x2c9   :  { %v1024_v48 = vpop.f32.mrf.mxu3 }
 0x2ca   :  { %v1201_v63 = vadd.f32 %v1131_v44, %v1024_v48  ;;  %v1685_v29 = vunpack.c.l.b16 %v1312_v49  ;;  %v3653_v48 = vld [vmem:[%s4917_s5 + $0x150] sm:$0xff] }
 0x2cb   :  { %1891 = vmatpush.bf16.msra.mxu2 %v3649_v9 }
 0x2cc   :  { %v1241_v16 = vadd.f32 %v4451_v53, %v1201_v63 }
 0x2ce   :  { %v1277_v14 = vmax.f32 %v1241_v16, 0.0  ;;  %3016 = vmatmul.msk.bf16.gmra.mxu3 %vm812_vm2, %v4318_v50  ;;  %v3652_v16 = vld [vmem:[%s4917_s5 + $0x148] sm:$0xff] }
 0x2cf   :  { %1892 = vmatpush.bf16.msra.mxu2 %v3648_v2 }
 0x2d0   :  { %v1313_v25 = vpack.c.bf16 %v1277_v14, %v1277_v14 }
 0x2d1   :  { %v1027_v26 = vpop.f32.mrf.mxu3 }
 0x2d2   :  { %v1686_v56 = vunpack.c.l.b16 %v1313_v25  ;;  %v1202_v61 = vadd.f32 %v1134_v43, %v1027_v26  ;;  %v3651_v25 = vld [vmem:[%s4917_s5 + $0x140] sm:$0xff] }
 0x2d3   :  { %1893 = vmatpush.bf16.msra.mxu2 %v3647_v30  ;;  %v3661_v30 = vld [vmem:[%s4917_s5 + $0x190] sm:$0xff] }
 0x2d4   :  { %v1687_v7 = vpack.c.b16 %v1686_v56, %v1685_v29  ;;  %v1242_v50 = vadd.f32 %v4451_v53, %v1202_v61 }
 0x2d6   :  { %3210 = vmatmul.msk.bf16.vlgmr.msrb.gmra.mxu1 %vm1382_vm3, %v1687_v7  ;;  %v1278_v45 = vmax.f32 %v1242_v50, 0.0  ;;  %v3657_v7 = vld [vmem:[%s4917_s5 + $0x170] sm:$0xff] }
 0x2d7   :  { %1947 = vmatpush.bf16.msrb.mxu1 %v3654_v6 }
 0x2d8   :  { %v1314_v20 = vpack.c.bf16 %v1278_v45, %v1278_v45 }
 0x2d9   :  { %v1029_v15 = vpop.f32.mrf.mxu3 }
 0x2da   :  { %v1203_v0 = vadd.f32 %v1136_v40, %v1029_v15  ;;  %v1742_v41 = vunpack.c.l.b16 %v1314_v20  ;;  %v3656_v15 = vld [vmem:[%s4917_s5 + $0x168] sm:$0xff]  ;;  %v3655_v20 = vld [vmem:[%s4917_s5 + $0x160] sm:$0xff] }
 0x2db   :  { %1948 = vmatpush.bf16.msrb.mxu1 %v3653_v48 }
 0x2dc   :  { %v1243_v47 = vadd.f32 %v4451_v53, %v1203_v0 }
 0x2de   :  { %v1279_v54 = vmax.f32 %v1243_v47, 0.0  ;;  %3017 = vmatmul.msk.bf16.gmra.mxu3 %vm812_vm2, %v4372_v36 }
 0x2df   :  { %1949 = vmatpush.bf16.msrb.mxu1 %v3652_v16 }
 0x2e0   :  { %v1315_v37 = vpack.c.bf16 %v1279_v54, %v1279_v54 }
 0x2e1   :  { %v1032_v13 = vpop.f32.mrf.mxu3 }
 0x2e2   :  { %v1743_v27 = vunpack.c.l.b16 %v1315_v37  ;;  %v1204_v52 = vadd.f32 %v1139_v12, %v1032_v13 }
 0x2e3   :  { %1950 = vmatpush.bf16.msrb.mxu1 %v3651_v25 }
 0x2e4   :  { %v1744_v42 = vpack.c.b16 %v1743_v27, %v1742_v41  ;;  %v1244_v36 = vadd.f32 %v4451_v53, %v1204_v52 }
 0x2e6   :  { %3235 = vmatmul.msk.bf16.vlgmr.msrb.gmra.mxu2 %vm1382_vm3, %v1744_v42  ;;  %v1280_v19 = vmax.f32 %v1244_v36, 0.0 }
 0x2e7   :  { %2004 = vmatpush.bf16.msrb.mxu2 %v3658_v5 }
 0x2e8   :  { %v1316_v63 = vpack.c.bf16 %v1280_v19, %v1280_v19 }
 0x2e9   :  { %v1034_v62 = vpop.f32.mrf.mxu3 }
 0x2ea   :  { %v1205_v44 = vadd.f32 %v1141_v3, %v1034_v62  ;;  %v1799_v14 = vunpack.c.l.b16 %v1316_v63  ;;  %v3660_v62 = vld [vmem:[%s4917_s5 + $0x188] sm:$0xff]  ;;  %v3659_v63 = vld [vmem:[%s4917_s5 + $0x180] sm:$0xff] }
 0x2eb   :  { %2005 = vmatpush.bf16.msrb.mxu2 %v3657_v7 }
 0x2ec   :  { %v1245_v4 = vadd.f32 %v4451_v53, %v1205_v44 }
 0x2ee   :  { %v1281_v51 = vmax.f32 %v1245_v4, 0.0 }
 0x2ef   :  { %2006 = vmatpush.bf16.msrb.mxu2 %v3656_v15  ;;  %v3663_v15 = vld [vmem:[%s4917_s5 + $0x1a0] sm:$0xff] }
 0x2f0   :  { %v1317_v60 = vpack.c.bf16 %v1281_v51, %v1281_v51 }
 0x2f1   :  { %v1037_v49 = vpop.f32.mrf.mxu3 }
 0x2f2   :  { %v1800_v33 = vunpack.c.l.b16 %v1317_v60  ;;  %v1206_v43 = vadd.f32 %v1144_v11, %v1037_v49 }
 0x2f3   :  { %2007 = vmatpush.bf16.msrb.mxu2 %v3655_v20 }
 0x2f4   :  { %v1801_v26 = vpack.c.b16 %v1800_v33, %v1799_v14  ;;  %v1246_v29 = vadd.f32 %v4451_v53, %v1206_v43 }
 0x2f6   :  { %3260 = vmatmul.msk.bf16.vlgmr.msra.gmra.mxu1 %vm1382_vm3, %v1801_v26  ;;  %v1282_v61 = vmax.f32 %v1246_v29, 0.0  ;;  %v3665_v26 = vld [vmem:[%s4917_s5 + $0x1b0] sm:$0xff] }
 0x2f7   :  { %2061 = vmatpush.bf16.msra.mxu1 %v3662_v10 }
 0x2f8   :  { %v1318_v34 = vpack.c.bf16 %v1282_v61, %v1282_v61 }
 0x2f9   :  { %v1039_v56 = vpop.f32.mrf.mxu3  ;;  %v1441_v54 = vpop.f32.mrf.mxu2 }
 0x2fa   :  { %v1207_v17 = vadd.f32 %v1146_v39, %v1039_v56  ;;  %v1856_v0 = vunpack.c.l.b16 %v1318_v34 }
 0x2fb   :  { %2062 = vmatpush.bf16.msra.mxu1 %v3661_v30 }
 0x2fc   :  { %v1247_v50 = vadd.f32 %v4451_v53, %v1207_v17 }
 0x2fe   :  { %v1283_v40 = vmax.f32 %v1247_v50, 0.0 }
 0x2ff   :  { %2063 = vmatpush.bf16.msra.mxu1 %v3660_v62 }
 0x300   :  { %v1319_v24 = vpack.c.bf16 %v1283_v40, %v1283_v40 }
 0x301   :  { %v1042_v45 = vpop.f32.mrf.mxu3  ;;  %v1443_v49 = vpop.f32.mrf.mxu2 }
 0x302   :  { %v1857_v9 = vunpack.c.l.b16 %v1319_v24  ;;  %v1208_v47 = vadd.f32 %v1149_v59, %v1042_v45 }
 0x303   :  { %v1395_v2 = vpop.f32.mrf.mxu1  ;;  %2064 = vmatpush.bf16.msra.mxu1 %v3659_v63 }
 0x304   :  { %v1858_v12 = vpack.c.b16 %v1857_v9, %v1856_v0  ;;  %v1442_v37 = vadd.f32 %v1441_v54, %v1395_v2  ;;  %v1248_v13 = vadd.f32 %v4451_v53, %v1208_v47  ;;  %v3669_v54 = vld [vmem:[%s4917_s5 + $0x1d0] sm:$0xff] }
 0x306   :  { %3285 = vmatmul.msk.bf16.vlgmr.msra.gmra.mxu2 %vm1382_vm3, %v1858_v12  ;;  %v1284_v27 = vmax.f32 %v1248_v13, 0.0  ;;  %v3668_v13 = vld [vmem:[%s4917_s5 + $0x1c8] sm:$0xff] }
 0x307   :  { %2118 = vmatpush.bf16.msra.mxu2 %v3666_v28 }
 0x308   :  { %v1320_v6 = vpack.c.bf16 %v1284_v27, %v1284_v27 }
 0x309   :  { %v1044_v41 = vpop.f32.mrf.mxu3 }
 0x30a   :  { %v1209_v52 = vadd.f32 %v1151_v22, %v1044_v41  ;;  %v1913_v44 = vunpack.c.l.b16 %v1320_v6 }
 0x30b   :  { %v1397_v42 = vpop.f32.mrf.mxu1  ;;  %2119 = vmatpush.bf16.msra.mxu2 %v3665_v26 }
 0x30c   :  { %v1249_v36 = vadd.f32 %v4451_v53, %v1209_v52  ;;  %v1444_v33 = vadd.f32 %v1443_v49, %v1397_v42  ;;  %v3672_v49 = vld [vmem:[%s4917_s5 + $0x1e8] sm:$0xff] }
 0x30e   :  { %v1285_v3 = vmax.f32 %v1249_v36, 0.0  ;;  %v3667_v36 = vld [vmem:[%s4917_s5 + $0x1c0] sm:$0xff] }
 0x30f   :  { %2120 = vmatpush.bf16.msra.mxu2 %v3664_v38 }
 0x310   :  { %v1321_v23 = vpack.c.bf16 %v1285_v3, %v1285_v3 }
 0x311   :  { %v1047_v19 = vpop.f32.mrf.mxu3 }
 0x312   :  { %v1914_v48 = vunpack.c.l.b16 %v1321_v23  ;;  %v1210_v4 = vadd.f32 %v1154_v8, %v1047_v19  ;;  %v4941_v23 = vld [vmem:[#allocation2_spill] sm:$0xff] }
 0x313   :  { %v1496_v51 = vpop.f32.mrf.mxu1  ;;  %2121 = vmatpush.bf16.msra.mxu2 %v3663_v15  ;;  %v4942_v19 = vld [vmem:[#allocation10_spill] sm:$0xff] }
 0x314   :  { %v1915_v16 = vpack.c.b16 %v1914_v48, %v1913_v44  ;;  %v1501_v11 = vadd.f32 %v1496_v51, %v1442_v37  ;;  %v1250_v60 = vadd.f32 %v4451_v53, %v1210_v4  ;;  %v1166_v44 = vadd.f32 %v4942_v19, %v4941_v23  ;;  %v3673_v51 = vld [vmem:[%s4917_s5 + $0x1f0] sm:$0xff] }
 0x316   :  { %3310 = vmatmul.msk.bf16.vlgmr.msrb.gmra.mxu1 %vm1382_vm3, %v1915_v16  ;;  %v1286_v43 = vmax.f32 %v1250_v60, 0.0 }
 0x317   :  { %2175 = vmatpush.bf16.msrb.mxu1 %v3670_v57 }
 0x318   :  { %v1322_v56 = vpack.c.bf16 %v1286_v43, %v1286_v43 }
 0x319   :  { %v1049_v14 = vpop.f32.mrf.mxu3 }
 0x31a   :  { %v1211_v25 = vadd.f32 %v1156_v1, %v1049_v14  ;;  %v1970_v50 = vunpack.c.l.b16 %v1322_v56  ;;  %v4943_v14 = vld [vmem:[#allocation3_spill] sm:$0xff]  ;;  %v3671_v56 = vld [vmem:[%s4917_s5 + $0x1e0] sm:$0xff] }
 0x31b   :  { %v1498_v29 = vpop.f32.mrf.mxu1  ;;  %2176 = vmatpush.bf16.msrb.mxu1 %v3669_v54  ;;  %v3676_v54 = vld [vmem:[%s4917_s5 + $0x208] sm:$0xff] }
 0x31c   :  { %v1251_v5 = vadd.f32 %v4451_v53, %v1211_v25  ;;  %v1502_v39 = vadd.f32 %v1498_v29, %v1444_v33  ;;  %v4944_v33 = vld [vmem:[#allocation11_spill] sm:$0xff] }
 0x31d   :  { %v1169_v43 = vadd.f32 %v4944_v33, %v4943_v14 }
 0x31e   :  { %v1287_v61 = vmax.f32 %v1251_v5, 0.0 }
 0x31f   :  { %2177 = vmatpush.bf16.msrb.mxu1 %v3668_v13 }
 0x320   :  { %v1323_v17 = vpack.c.bf16 %v1287_v61, %v1287_v61 }
 0x321   :  { %v1052_v7 = vpop.f32.mrf.mxu3 }
 0x322   :  { %v1971_v34 = vunpack.c.l.b16 %v1323_v17  ;;  %v1212_v40 = vadd.f32 %v1159_v55, %v1052_v7  ;;  %v3682_v55 = vld [vmem:[%s4917_s5 + $0x238] sm:$0xff]  ;;  %v4945_v7 = vld [vmem:[#allocation4_spill] sm:$0xff] }
 0x323   :  { %2178 = vmatpush.bf16.msrb.mxu1 %v3667_v36  ;;  %v3678_v17 = vld [vmem:[%s4917_s5 + $0x218] sm:$0xff] }
 0x324   :  { %v1972_v59 = vpack.c.b16 %v1971_v34, %v1970_v50  ;;  %v1252_v24 = vadd.f32 %v4451_v53, %v1212_v40  ;;  %v4946_v50 = vld [vmem:[#allocation12_spill] sm:$0xff] }
 0x325   :  { %v1171_v34 = vadd.f32 %v4946_v50, %v4945_v7 }
 0x326   :  { %3335 = vmatmul.msk.bf16.vlgmr.msrb.gmra.mxu2 %vm1382_vm3, %v1972_v59  ;;  %v1288_v9 = vmax.f32 %v1252_v24, 0.0 }
 0x327   :  { %2232 = vmatpush.bf16.msrb.mxu2 %v3674_v32 }
 0x328   :  { %v1324_v12 = vpack.c.bf16 %v1288_v9, %v1288_v9 }
 0x329   :  { %v1054_v45 = vpop.f32.mrf.mxu3  ;;  %v1553_v0 = vpop.f32.mrf.mxu2 }
 0x32a   :  { %v1213_v47 = vadd.f32 %v1161_v58, %v1054_v45  ;;  %v1558_v20 = vadd.f32 %v1553_v0, %v1501_v11  ;;  %v2027_v27 = vunpack.c.l.b16 %v1324_v12  ;;  %v3681_v58 = vld [vmem:[%s4917_s5 + $0x230] sm:$0xff]  ;;  %v4948_v12 = vld [vmem:[#allocation13_spill] sm:$0xff] }
 0x32b   :  { %2233 = vmatpush.bf16.msrb.mxu2 %v3673_v51  ;;  %v3677_v45 = vld [vmem:[%s4917_s5 + $0x210] sm:$0xff]  ;;  %v4951_v51 = vld [vmem:[#allocation7_spill] sm:$0xff] }
 0x32c   :  { %v1253_v2 = vadd.f32 %v4451_v53, %v1213_v47 }
 0x32e   :  { %v1289_v37 = vmax.f32 %v1253_v2, 0.0  ;;  %v4947_v2 = vld [vmem:[#allocation5_spill] sm:$0xff] }
 0x32f   :  { %2234 = vmatpush.bf16.msrb.mxu2 %v3672_v49 }
 0x330   :  { %v1325_v10 = vpack.c.bf16 %v1289_v37, %v1289_v37  ;;  %v1174_v37 = vadd.f32 %v4948_v12, %v4947_v2  ;;  %v3686_v2 = vld [vmem:[%s4921_s7 + $0x18] sm:$0xff]  ;;  %v3683_v12 = vld [vmem:[%s4921_s7] sm:$0xff] }
 0x331   :  { %v1057_v22 = vpop.f32.mrf.mxu3  ;;  %v1555_v41 = vpop.f32.mrf.mxu2 }
 0x332   :  { %v2028_v52 = vunpack.c.l.b16 %v1325_v10  ;;  %v1214_v30 = vadd.f32 %v1164_v18, %v1057_v22  ;;  %v1559_v42 = vadd.f32 %v1555_v41, %v1502_v39 }
 0x333   :  { %v1610_v6 = vpop.f32.mrf.mxu1  ;;  %2235 = vmatpush.bf16.msrb.mxu2 %v3671_v56 }
 0x334   :  { %v2029_v3 = vpack.c.b16 %v2028_v52, %v2027_v27  ;;  %v1615_v62 = vadd.f32 %v1610_v6, %v1558_v20  ;;  %v1254_v8 = vadd.f32 %v4451_v53, %v1214_v30  ;;  %v3680_v20 = vld [vmem:[%s4917_s5 + $0x228] sm:$0xff]  ;;  %v3679_v52 = vld [vmem:[%s4917_s5 + $0x220] sm:$0xff] }
 0x335   :  { %v3675_v30 = vld [vmem:[%s4917_s5 + $0x200] sm:$0xff] }
 0x336   :  { %3360 = vmatmul.msk.bf16.vlgmr.msra.gmra.mxu1 %vm1382_vm3, %v2029_v3  ;;  %v1290_v4 = vmax.f32 %v1254_v8, 0.0  ;;  %v4950_v8 = vld [vmem:[#allocation14_spill] sm:$0xff] }
 0x337   :  { %2289 = vmatpush.bf16.msra.mxu1 %v3678_v17 }
 0x338   :  { %v1326_v28 = vpack.c.bf16 %v1290_v4, %v1290_v4 }
 0x339   :  { %v1059_v48 = vpop.f32.mrf.mxu3 }
 0x33a   :  { %v1215_v63 = vadd.f32 %v1166_v44, %v1059_v48  ;;  %v2084_v29 = vunpack.c.l.b16 %v1326_v28 }
 0x33b   :  { %v1612_v16 = vpop.f32.mrf.mxu1  ;;  %2290 = vmatpush.bf16.msra.mxu1 %v3677_v45 }
 0x33c   :  { %v1255_v11 = vadd.f32 %v4451_v53, %v1215_v63  ;;  %v1616_v60 = vadd.f32 %v1612_v16, %v1559_v42  ;;  %v1179_v16 = vadd.f32 %v4478_v31, %v4951_v51 }
 0x33e   :  { %v1291_v1 = vmax.f32 %v1255_v11, 0.0 }
 0x33f   :  { %2291 = vmatpush.bf16.msra.mxu1 %v3676_v54 }
 0x340   :  { %v1327_v25 = vpack.c.bf16 %v1291_v1, %v1291_v1 }
 0x341   :  { %v1062_v26 = vpop.f32.mrf.mxu3 }
 0x342   :  { %v2085_v5 = vunpack.c.l.b16 %v1327_v25  ;;  %v1216_v39 = vadd.f32 %v1169_v43, %v1062_v26  ;;  %v4952_v43 = vld [vmem:[#allocation9_spill] sm:$0xff] }
 0x343   :  { %2292 = vmatpush.bf16.msra.mxu1 %v3675_v30  ;;  %v1181_v25 = vadd.f32 %v4489_v35, %v4952_v43 }
 0x344   :  { %v2086_v61 = vpack.c.b16 %v2085_v5, %v2084_v29  ;;  %v1256_v38 = vadd.f32 %v4451_v53, %v1216_v39 }
 0x346   :  { %3385 = vmatmul.msk.bf16.vlgmr.msra.gmra.mxu2 %vm1382_vm3, %v2086_v61  ;;  %v1292_v59 = vmax.f32 %v1256_v38, 0.0 }
 0x347   :  { %2346 = vmatpush.bf16.msra.mxu2 %v3682_v55 }
 0x348   :  { %v1328_v9 = vpack.c.bf16 %v1292_v59, %v1292_v59 }
 0x349   :  { %v1064_v40 = vpop.f32.mrf.mxu3  ;;  %v1667_v15 = vpop.f32.mrf.mxu2 }
 0x34a   :  { %v1217_v24 = vadd.f32 %v1171_v34, %v1064_v40  ;;  %v1672_v57 = vadd.f32 %v1667_v15, %v1615_v62  ;;  %v2141_v10 = vunpack.c.l.b16 %v1328_v9  ;;  %v4949_v62 = vld [vmem:[#allocation6_spill] sm:$0xff] }
 0x34b   :  { %2347 = vmatpush.bf16.msra.mxu2 %v3681_v58  ;;  %v1176_v32 = vadd.f32 %v4950_v8, %v4949_v62 }
 0x34c   :  { %v1257_v0 = vadd.f32 %v4451_v53, %v1217_v24 }
 0x34e   :  { %v1293_v47 = vmax.f32 %v1257_v0, 0.0 }
 0x34f   :  { %2348 = vmatpush.bf16.msra.mxu2 %v3680_v20  ;;  %v3684_v20 = vld [vmem:[%s4921_s7 + $0x8] sm:$0xff] }
 0x350   :  { %v1329_v13 = vpack.c.bf16 %v1293_v47, %v1293_v47 }
 0x351   :  { %v1067_v46 = vpop.f32.mrf.mxu3  ;;  %v1669_v18 = vpop.f32.mrf.mxu2 }
 0x352   :  { %v2142_v22 = vunpack.c.l.b16 %v1329_v13  ;;  %v1218_v41 = vadd.f32 %v1174_v37, %v1067_v46  ;;  %v4765_v27 = vadd.f32 %v1669_v18, %v1616_v60  ;;  %v3685_v37 = vld [vmem:[%s4921_s7 + $0x10] sm:$0xff]  ;;  %v3688_v46 = vld [vmem:[%s4921_s7 + $0x28] sm:$0xff] }
 0x353   :  { %v1724_v42 = vpop.f32.mrf.mxu1  ;;  %2349 = vmatpush.bf16.msra.mxu2 %v3679_v52 }
 0x354   :  { %v2143_v36 = vpack.c.b16 %v2142_v22, %v2141_v10  ;;  %v1729_v6 = vadd.f32 %v1724_v42, %v1672_v57  ;;  %v1258_v3 = vadd.f32 %v4451_v53, %v1218_v41  ;;  %v3687_v41 = vld [vmem:[%s4921_s7 + $0x20] sm:$0xff] }
 0x356   :  { %3410 = vmatmul.msk.bf16.vlgmr.msrb.gmra.mxu1 %vm1382_vm3, %v2143_v36  ;;  %v1294_v19 = vmax.f32 %v1258_v3, 0.0 }
 0x357   :  { %2396 = vmatpush.bf16.msrb.mxu1 %v3684_v20  ;;  %v3691_v20 = vld [vmem:[%s4923_s9 + $0x10] sm:$0xff] }
 0x358   :  { %v1330_v4 = vpack.c.bf16 %v1294_v19, %v1294_v19 }
 0x359   :  { %v1069_v23 = vpop.f32.mrf.mxu3 }
 0x35a   :  { %v1219_v44 = vadd.f32 %v1176_v32, %v1069_v23  ;;  %v2198_v28 = vunpack.c.l.b16 %v1330_v4 }
 0x35b   :  { %v1726_v34 = vpop.f32.mrf.mxu1  ;;  %2397 = vmatpush.bf16.msrb.mxu1 %v3683_v12 }
 0x35c   :  { %v1259_v48 = vadd.f32 %v4451_v53, %v1219_v44  ;;  %v1730_v10 = vadd.f32 %v1726_v34, %v4765_v27 }
 0x35e   :  { %v1295_v63 = vmax.f32 %v1259_v48, 0.0 }
 0x360   :  { %v1331_v11 = vpack.c.bf16 %v1295_v63, %v1295_v63 }
 0x361   :  { %v1072_v60 = vpop.f32.mrf.mxu3 }
 0x362   :  { %v2199_v1 = vunpack.c.l.b16 %v1331_v11  ;;  %v1220_v49 = vadd.f32 %v1179_v16, %v1072_v60 }
 0x364   :  { %v2200_v14 = vpack.c.b16 %v2199_v1, %v2198_v28  ;;  %v1260_v33 = vadd.f32 %v4451_v53, %v1220_v49  ;;  %v3710_v49 = vld [vmem:[%s4919_s6] ss:$0 sm:$0xff]  ;;  %s3766_s6 = smov 32  }
 0x366   :  { %3435 = vmatmul.msk.bf16.vlgmr.msrb.gmra.mxu2 %vm1382_vm3, %v2200_v14  ;;  %v1296_v5 = vmax.f32 %v1260_v33, 0.0 }
 0x367   :  { %2470 = vmatpush.bf16.msrb.mxu2 %v3686_v2 }
 0x368   :  { %v1332_v61 = vpack.c.bf16 %v1296_v5, %v1296_v5 }
 0x369   :  { %v1074_v26 = vpop.f32.mrf.mxu3  ;;  %v1781_v29 = vpop.f32.mrf.mxu2 }
 0x36a   :  { %v1221_v39 = vadd.f32 %v1181_v25, %v1074_v26  ;;  %v1786_v56 = vadd.f32 %v1781_v29, %v1729_v6  ;;  %v2255_v17 = vunpack.c.l.b16 %v1332_v61 }
 0x36b   :  { %2471 = vmatpush.bf16.msrb.mxu2 %v3685_v37 }
 0x36c   :  { %v1261_v31 = vadd.f32 %v4451_v53, %v1221_v39 }
 0x36e   :  { %v1297_v38 = vmax.f32 %v1261_v31, 0.0 }
 0x370   :  { %v1333_v55 = vpack.c.bf16 %v1297_v38, %v1297_v38 }
 0x371   :  { %v1783_v35 = vpop.f32.mrf.mxu2 }
 0x372   :  { %v2256_v7 = vunpack.c.l.b16 %v1333_v55  ;;  %v1787_v52 = vadd.f32 %v1783_v35, %v1730_v10  ;;  %v3713_v35 = vld [vmem:[%s4920_s8 + $0x2] ss:$0 sm:$0xff] }
 0x373   :  { %v1838_v40 = vpop.f32.mrf.mxu1 }
 0x374   :  { %v2257_v50 = vpack.c.b16 %v2256_v7, %v2255_v17  ;;  %v1843_v22 = vadd.f32 %v1838_v40, %v1786_v56  ;;  %v3711_v56 = vld [vmem:[%s4920_s8] ss:$0 sm:$0xff] }
 0x376   :  { %3460 = vmatmul.msk.bf16.vlgmr.msra.gmra.mxu1 %vm1382_vm3, %v2257_v50  ;;  %3485 = vmatmul.msk.bf16.vlgmr.msra.gmra.mxu2 %vm1382_vm3, %v4524_v21 }
 0x377   :  { %2508 = vmatpush.bf16.msra.mxu1 %v3688_v46 }
 0x37b   :  { %v1840_v59 = vpop.f32.mrf.mxu1  ;;  %2509 = vmatpush.bf16.msra.mxu1 %v3687_v41 }
 0x37c   :  { %v1844_v42 = vadd.f32 %v1840_v59, %v1787_v52  ;;  %v3693_v52 = vld [vmem:[%s4923_s9 + $0x20] sm:$0xff] }
 0x389   :  { %v1895_v15 = vpop.f32.mrf.mxu2 }
 0x38a   :  { %v1900_v30 = vadd.f32 %v1895_v15, %v1843_v22 }
 0x391   :  { %v1897_v24 = vpop.f32.mrf.mxu2 }
 0x392   :  { %v1901_v3 = vadd.f32 %v1897_v24, %v1844_v42 }
 0x393   :  { %v1952_v57 = vpop.f32.mrf.mxu1 }
 0x394   :  { %v1957_v36 = vadd.f32 %v1952_v57, %v1900_v30  ;;  %v3690_v57 = vld [vmem:[%s4923_s9 + $0x8] sm:$0xff] }
 0x395   :  { %2590 = vmatpush.bf16.msra.mxu2 %v3690_v57 }
 0x39b   :  { %v1954_v53 = vpop.f32.mrf.mxu1 }
 0x39c   :  { %v1958_v32 = vadd.f32 %v1954_v53, %v1901_v3 }
 0x3a9   :  { %v2009_v58 = vpop.f32.mrf.mxu2 }
 0x3aa   :  { %v2014_v62 = vadd.f32 %v2009_v58, %v1957_v36  ;;  %v3692_v58 = vld [vmem:[%s4923_s9 + $0x18] sm:$0xff] }
 0x3b1   :  { %v2011_v45 = vpop.f32.mrf.mxu2 }
 0x3b2   :  { %v2015_v19 = vadd.f32 %v2011_v45, %v1958_v32 }
 0x3b3   :  { %v2066_v0 = vpop.f32.mrf.mxu1 }
 0x3b4   :  { %v2071_v23 = vadd.f32 %v2066_v0, %v2014_v62 }
 0x3bb   :  { %v2068_v47 = vpop.f32.mrf.mxu1 }
 0x3bc   :  { %v2072_v27 = vadd.f32 %v2068_v47, %v2015_v19  ;;  %v3689_v47 = vld [vmem:[%s4923_s9] sm:$0xff] }
 0x3bd   :  { %2591 = vmatpush.bf16.msra.mxu2 %v3689_v47 }
 0x3c9   :  { %v2123_v9 = vpop.f32.mrf.mxu2 }
 0x3ca   :  { %v2128_v44 = vadd.f32 %v2123_v9, %v2071_v23 }
 0x3d1   :  { %v2125_v54 = vpop.f32.mrf.mxu2 }
 0x3d2   :  { %v2129_v63 = vadd.f32 %v2125_v54, %v2072_v27 }
 0x3d3   :  { %v2180_v21 = vpop.f32.mrf.mxu1 }
 0x3d4   :  { %v2185_v48 = vadd.f32 %v2180_v21, %v2128_v44 }
 0x3db   :  { %v2182_v18 = vpop.f32.mrf.mxu1 }
 0x3dc   :  { %v2186_v16 = vadd.f32 %v2182_v18, %v2129_v63  ;;  %v3712_v18 = vld [vmem:[%s4920_s8 + $0x1] ss:$0 sm:$0xff] }
 0x3e9   :  { %v2237_v13 = vpop.f32.mrf.mxu2 }
 0x3ea   :  { %v2242_v51 = vadd.f32 %v2237_v13, %v2185_v48  ;;  %v3694_v13 = vld [vmem:[%s4923_s9 + $0x28] sm:$0xff] }
 0x3f1   :  { %v2239_v6 = vpop.f32.mrf.mxu2 }
 0x3f2   :  { %v2243_v28 = vadd.f32 %v2239_v6, %v2186_v16 }
 0x3f3   :  { %v2294_v8 = vpop.f32.mrf.mxu1 }
 0x3f4   :  { %v2299_v11 = vadd.f32 %v2294_v8, %v2242_v51 }
 0x3f9   :  { %v2351_v4 = vpop.f32.mrf.mxu2 }
 0x3fa   :  { %v2356_v1 = vadd.f32 %v2351_v4, %v2299_v11 }
 0x3fb   :  { %v2296_v60 = vpop.f32.mrf.mxu1 }
 0x3fc   :  { %v2300_v14 = vadd.f32 %v2296_v60, %v2243_v28  ;;  %v2362_v43 = vadd.f32 %v3710_v49, %v2356_v1 }
 0x3fe   :  { %v2364_v29 = vmax.f32 %v2362_v43, 0.0 }
 0x401   :  { %v2353_v33 = vpop.f32.mrf.mxu2 }
 0x402   :  { %v2357_v25 = vadd.f32 %v2353_v33, %v2300_v14 }
 0x404   :  { %v2363_v26 = vadd.f32 %v3710_v49, %v2357_v25 }
 0x406   :  { %v2365_v5 = vmax.f32 %v2363_v26, 0.0 }
 0x408   :  { %v2366_v39 = vpack.c.bf16 %v2365_v5, %v2364_v29 }
 0x40a   :  { %3494 = vmatmul.msk.bf16.vlgmr.msrb.gmra.mxu1 %vm812_vm2, %v2366_v39  ;;  %3510 = vmatmul.msk.bf16.vlgmr.msrb.gmra.mxu2 %vm812_vm2, %v2366_v39 }
 0x40b   :  { %2664 = vmatpush.bf16.msrb.mxu1 %v3692_v58  ;;  %2702 = vmatpush.bf16.msrb.mxu2 %v3694_v13 }
 0x40f   :  { %2665 = vmatpush.bf16.msrb.mxu1 %v3691_v20  ;;  %2703 = vmatpush.bf16.msrb.mxu2 %v3693_v52 }
 0x41a   :  { %3524 = vmatmul.msk.bf16.vlgmr.msra.gmra.mxu1 %vm812_vm2, %v2366_v39 }
 0x487   :  { %v2399_v31 = vpop.f32.mrf.mxu1 }
 0x488   :  { %v2400_v61 = vadd.f32 %v3711_v56, %v2399_v31 }
 0x48a   :  { %v3495_v38 = vmul.f32 -1.442695, %v2400_v61 }
 0x48c   :  { %3718 = vpow2.f32 %v3495_v38 }
 0x48d   :  { %v2473_v45 = vpop.f32.mrf.mxu2 }
 0x48e   :  { %v2474_v36 = vadd.f32 %v3712_v18, %v2473_v45 }
 0x48f   :  { %v2401_v55 = vpop.f32.mrf.mxu1 }
 0x490   :  { %v2402_v17 = vadd.f32 %v3711_v56, %v2401_v55 }
 0x492   :  { %v3719_v7 = vpop.eup %3718  ;;  %v3496_v50 = vmul.f32 -1.442695, %v2402_v17 }
 0x493   :  { %v4816_v34 = vadd.f32 1.0, %v3719_v7 }
 0x494   :  { %3720 = vpow2.f32 %v3496_v50 }
 0x495   :  { %3722 = vrcp.f32 %v4816_v34  ;;  %v2475_v30 = vpop.f32.mrf.mxu2  ;;  %v2423_v8 = vand.u32 2147483648, %v4816_v34  ;;  %vm2417_vm6 = vweird.f32 %v4816_v34  ;;  %v2421_v23 = vand.u32 2147483647, %v4816_v34 }
 0x496   :  { %v2476_v62 = vadd.f32 %v3712_v18, %v2475_v30 }
 0x497   :  { %v2511_v40 = vpop.f32.mrf.mxu1  ;;  %v2424_v11 = vor.u32 1.1754944e-38, %v2423_v8  ;;  %vm2422_vm10 = vcmp.eq.f32.partialorder %v2421_v23, 8.507059e+37  ;;  %v3698_v23 = vld [vmem:[%s4924_s11 + $0x18] sm:$0xff] }
 0x498   :  { %v2512_v15 = vadd.f32 %v3713_v35, %v2511_v40  ;;  %2808 = vmatpush.bf16.msra.mxu1 %v3698_v23 }
 0x49a   :  { %v3721_v59 = vpop.eup %3720  ;;  %v3525_v24 = vmul.f32 -1.442695, %v2512_v15 }
 0x49b   :  { %v3723_v53 = vpop.eup %3722  ;;  %v2411_v0 = vadd.f32 1.0, %v3721_v59 }
 0x49c   :  { %v2413_v9 = vmul.f32 %v3723_v53, %v4816_v34  ;;  %3724 = vpow2.f32 %v3525_v24  ;;  %vm2418_vm4 = vweird.f32 %v3723_v53 }
 0x49d   :  { %3726 = vrcp.f32 %v2411_v0  ;;  %v2438_v44 = vand.u32 2147483648, %v2411_v0  ;;  %vm4850_vm7 = vmor %vm2417_vm6, %vm2418_vm4  ;;  %vm2432_vm8 = vweird.f32 %v2411_v0  ;;  %v2436_v4 = vand.u32 2147483647, %v2411_v0 }
 0x49e   :  { %v2414_v21 = vsub.f32 1.0, %v2413_v9  ;;  %v3715_v9 = vld [vmem:[%s4922_s10] ss:$0 sm:$0xff] }
 0x49f   :  { %v2513_v54 = vpop.f32.mrf.mxu1  ;;  %v2439_v28 = vor.u32 1.1754944e-38, %v2438_v44  ;;  %vm2437_vm11 = vcmp.eq.f32.partialorder %v2436_v4, 8.507059e+37  ;;  %v3714_v44 = vld [vmem:[%s4922_s10 + $0x1] ss:$0 sm:$0xff] }
 0x4a0   :  { %v2514_v2 = vadd.f32 %v3713_v35, %v2513_v54  ;;  %v2415_v22 = vmul.f32 %v3723_v53, %v2414_v21 }
 0x4a2   :  { %v3725_v12 = vpop.eup %3724  ;;  %v3526_v37 = vmul.f32 -1.442695, %v2514_v2  ;;  %v2416_v6 = vadd.f32 %v3723_v53, %v2415_v22 }
 0x4a3   :  { %v3727_v46 = vpop.eup %3726  ;;  %v4841_v10 = vadd.f32 1.0, %v3725_v12 }
 0x4a4   :  { %v2428_v41 = vmul.f32 %v3727_v46, %v2411_v0  ;;  %3728 = vpow2.f32 %v3526_v37  ;;  %vm2433_vm5 = vweird.f32 %v3727_v46  ;;  %v2420_v51 = vsel %vm4850_vm7, %v3723_v53, %v2416_v6 }
 0x4a5   :  { %3730 = vrcp.f32 %v4841_v10  ;;  %vm2434_vm9 = vmor %vm2432_vm8, %vm2433_vm5  ;;  %v2425_v49 = vsel %vm2422_vm10, %v2424_v11, %v2420_v51  ;;  %v2535_v31 = vand.u32 2147483648, %v4841_v10  ;;  %vm2529_vm13 = vweird.f32 %v4841_v10 }
 0x4a6   :  { %v2429_v42 = vsub.f32 1.0, %v2428_v41  ;;  %3732 = vtanh.f32 %v2474_v36  ;;  %v2533_v61 = vand.u32 2147483647, %v4841_v10 }
 0x4a7   :  { %3734 = vtanh.f32 %v2476_v62  ;;  %v2536_v34 = vor.u32 1.1754944e-38, %v2535_v31 }
 0x4a8   :  { %v2430_v3 = vmul.f32 %v3727_v46, %v2429_v42  ;;  %vm2534_vm0 = vcmp.eq.f32.partialorder %v2533_v61, 8.507059e+37 }
 0x4aa   :  { %v3729_v32 = vpop.eup %3728  ;;  %v2431_v19 = vadd.f32 %v3727_v46, %v2430_v3 }
 0x4ab   :  { %v3731_v27 = vpop.eup %3730  ;;  %v2523_v63 = vadd.f32 1.0, %v3729_v32 }
 0x4ac   :  { %v2525_v16 = vmul.f32 %v3731_v27, %v4841_v10  ;;  %v2435_v60 = vsel %vm2434_vm9, %v3727_v46, %v2431_v19  ;;  %v3733_v43 = vpop.eup %3732  ;;  %vm2530_vm12 = vweird.f32 %v3731_v27  ;;  %v3716_v46 = vld [vmem:[%s4922_s10 + $0x2] ss:$0 sm:$0xff] }
 0x4ad   :  { %3736 = vrcp.f32 %v2523_v63  ;;  %v2440_v14 = vsel %vm2437_vm11, %v2439_v28, %v2435_v60  ;;  %v3735_v25 = vpop.eup %3734  ;;  %v2554_v26 = vmul.f32 %v3733_v43, %v2425_v49  ;;  %vm2531_vm14 = vmor %vm2529_vm13, %vm2530_vm12  ;;  %v2550_v55 = vand.u32 2147483648, %v2523_v63  ;;  %v3696_v49 = vld [vmem:[%s4924_s11 + $0x8] sm:$0xff] }
 0x4ae   :  { %v2526_v1 = vsub.f32 1.0, %v2525_v16  ;;  %v2555_v5 = vmul.f32 %v3735_v25, %v2440_v14  ;;  %v2548_v50 = vand.u32 2147483647, %v2523_v63  ;;  %vm2544_vm4 = vweird.f32 %v2523_v63 }
 0x4af   :  { %3738 = vtanh.f32 %v2554_v26  ;;  %v2551_v15 = vor.u32 1.1754944e-38, %v2550_v55 }
 0x4b0   :  { %v2527_v33 = vmul.f32 %v3731_v27, %v2526_v1  ;;  %3740 = vtanh.f32 %v2555_v5  ;;  %vm2549_vm6 = vcmp.eq.f32.partialorder %v2548_v50, 8.507059e+37 }
 0x4b2   :  { %v2528_v39 = vadd.f32 %v3731_v27, %v2527_v33 }
 0x4b3   :  { %v3737_v29 = vpop.eup %3736 }
 0x4b4   :  { %v2540_v56 = vmul.f32 %v3737_v29, %v2523_v63  ;;  %v2532_v17 = vsel %vm2531_vm14, %v3731_v27, %v2528_v39  ;;  %vm2545_vm15 = vweird.f32 %v3737_v29  ;;  %v3697_v63 = vld [vmem:[%s4924_s11 + $0x10] sm:$0xff] }
 0x4b5   :  { %v2537_v40 = vsel %vm2534_vm0, %v2536_v34, %v2532_v17  ;;  %vm2546_vm5 = vmor %vm2544_vm4, %vm2545_vm15  ;;  %v3739_v59 = vpop.eup %3738  ;;  %2809 = vmatpush.bf16.msra.mxu1 %v3697_v63 }
 0x4b6   :  { %v2541_v38 = vsub.f32 1.0, %v2540_v56  ;;  %v3741_v57 = vpop.eup %3740  ;;  %v4860_v53 = vmul.f32 %v3739_v59, %v2537_v40 }
 0x4b8   :  { %v2542_v7 = vmul.f32 %v3737_v29, %v2541_v38 }
 0x4b9   :  { %2810 = vmatpush.bf16.msra.mxu1 %v3696_v49 }
 0x4ba   :  { %v2543_v35 = vadd.f32 %v3737_v29, %v2542_v7 }
 0x4bc   :  { %v2547_v24 = vsel %vm2546_vm5, %v3737_v29, %v2543_v35 }
 0x4bd   :  { %v2552_v58 = vsel %vm2549_vm6, %v2551_v15, %v2547_v24 }
 0x4be   :  { %v4862_v45 = vmul.f32 %v3741_v57, %v2552_v58 }
 0x4c0   :  { %v2560_v0 = vpack.c.bf16 %v4862_v45, %v4860_v53 }
 0x4c2   :  { %3535 = vmatmul.msk.bf16.vlgmr.msra.gmra.mxu2 %vm812_vm2, %v2560_v0  ;;  %3551 = vmatmul.msk.bf16.vlgmr.msrb.gmra.mxu1 %vm812_vm2, %v2560_v0 }
 0x4d2   :  { %3565 = vmatmul.msk.bf16.vlgmr.msrb.gmra.mxu2 %vm812_vm2, %v2560_v0 }
 0x53f   :  { %v2667_v30 = vpop.f32.mrf.mxu1 }
 0x540   :  { %v2668_v11 = vadd.f32 %v3714_v44, %v2667_v30 }
 0x545   :  { %v2593_v47 = vpop.f32.mrf.mxu2 }
 0x546   :  { %v2594_v20 = vadd.f32 %v3715_v9, %v2593_v47 }
 0x547   :  { %v2669_v51 = vpop.f32.mrf.mxu1 }
 0x548   :  { %v3536_v54 = vmul.f32 -1.442695, %v2594_v20  ;;  %v2670_v60 = vadd.f32 %v3714_v44, %v2669_v51 }
 0x54a   :  { %3742 = vpow2.f32 %v3536_v54 }
 0x54d   :  { %v2595_v21 = vpop.f32.mrf.mxu2 }
 0x54e   :  { %v2596_v2 = vadd.f32 %v3715_v9, %v2595_v21 }
 0x550   :  { %v3743_v12 = vpop.eup %3742  ;;  %v3537_v37 = vmul.f32 -1.442695, %v2596_v2 }
 0x551   :  { %v2604_v13 = vadd.f32 1.0, %v3743_v12 }
 0x552   :  { %3744 = vpow2.f32 %v3537_v37 }
 0x553   :  { %3746 = vrcp.f32 %v2604_v13  ;;  %v2617_v14 = vand.u32 2147483648, %v2604_v13  ;;  %vm2611_vm9 = vweird.f32 %v2604_v13  ;;  %v2615_v25 = vand.u32 2147483647, %v2604_v13 }
 0x555   :  { %v2705_v18 = vpop.f32.mrf.mxu2  ;;  %v2618_v61 = vor.u32 1.1754944e-38, %v2617_v14  ;;  %vm2616_vm13 = vcmp.eq.f32.partialorder %v2615_v25, 8.507059e+37 }
 0x556   :  { %v2706_v10 = vadd.f32 %v3716_v46, %v2705_v18 }
 0x558   :  { %v3745_v22 = vpop.eup %3744  ;;  %v3566_v41 = vmul.f32 -1.442695, %v2706_v10 }
 0x559   :  { %v3747_v52 = vpop.eup %3746  ;;  %v2605_v42 = vadd.f32 1.0, %v3745_v22 }
 0x55a   :  { %v2607_v36 = vmul.f32 %v3747_v52, %v2604_v13  ;;  %3748 = vpow2.f32 %v3566_v41  ;;  %vm2612_vm7 = vweird.f32 %v3747_v52 }
 0x55b   :  { %3750 = vrcp.f32 %v2605_v42  ;;  %v2632_v43 = vand.u32 2147483648, %v2605_v42  ;;  %vm2626_vm10 = vweird.f32 %v2605_v42  ;;  %vm2613_vm11 = vmor %vm2611_vm9, %vm2612_vm7  ;;  %v2630_v39 = vand.u32 2147483647, %v2605_v42 }
 0x55c   :  { %v2608_v3 = vsub.f32 1.0, %v2607_v36  ;;  %v3695_v36 = vld [vmem:[%s4924_s11] sm:$0xff] }
 0x55d   :  { %v2707_v6 = vpop.f32.mrf.mxu2  ;;  %v2633_v55 = vor.u32 1.1754944e-38, %v2632_v43  ;;  %vm2631_vm14 = vcmp.eq.f32.partialorder %v2630_v39, 8.507059e+37  ;;  %2811 = vmatpush.bf16.msra.mxu1 %v3695_v36 }
 0x55e   :  { %v2708_v62 = vadd.f32 %v3716_v46, %v2707_v6  ;;  %v2609_v48 = vmul.f32 %v3747_v52, %v2608_v3 }
 0x560   :  { %v3749_v8 = vpop.eup %3748  ;;  %v3567_v32 = vmul.f32 -1.442695, %v2708_v62  ;;  %v2610_v1 = vadd.f32 %v3747_v52, %v2609_v48 }
 0x561   :  { %v3751_v19 = vpop.eup %3750  ;;  %v4881_v27 = vadd.f32 1.0, %v3749_v8 }
 0x562   :  { %v2622_v4 = vmul.f32 %v3751_v19, %v2605_v42  ;;  %3752 = vpow2.f32 %v3567_v32  ;;  %vm2627_vm8 = vweird.f32 %v3751_v19  ;;  %v2614_v56 = vsel %vm2613_vm11, %v3747_v52, %v2610_v1 }
 0x563   :  { %3754 = vrcp.f32 %v4881_v27  ;;  %vm2628_vm12 = vmor %vm2626_vm10, %vm2627_vm8  ;;  %v2619_v7 = vsel %vm2616_vm13, %v2618_v61, %v2614_v56  ;;  %v2729_v0 = vand.u32 2147483648, %v4881_v27  ;;  %vm2723_vm0 = vweird.f32 %v4881_v27 }
 0x564   :  { %v2623_v16 = vsub.f32 1.0, %v2622_v4  ;;  %3756 = vtanh.f32 %v2668_v11  ;;  %v2727_v9 = vand.u32 2147483647, %v4881_v27 }
 0x565   :  { %3758 = vtanh.f32 %v2670_v60  ;;  %v2730_v12 = vor.u32 1.1754944e-38, %v2729_v0 }
 0x566   :  { %v2624_v28 = vmul.f32 %v3751_v19, %v2623_v16  ;;  %vm2728_vm6 = vcmp.eq.f32.partialorder %v2727_v9, 8.507059e+37 }
 0x568   :  { %v3753_v33 = vpop.eup %3752  ;;  %v2625_v26 = vadd.f32 %v3751_v19, %v2624_v28 }
 0x569   :  { %v3755_v29 = vpop.eup %3754  ;;  %v2717_v5 = vadd.f32 1.0, %v3753_v33 }
 0x56a   :  { %v2719_v31 = vmul.f32 %v3755_v29, %v4881_v27  ;;  %v2629_v38 = vsel %vm2628_vm12, %v3751_v19, %v2625_v26  ;;  %v3757_v35 = vpop.eup %3756  ;;  %vm2724_vm15 = vweird.f32 %v3755_v29  ;;  %v3717_v19 = vld [vmem:[%s4925_s12] ss:$0 sm:$0xff] }
 0x56b   :  { %3760 = vrcp.f32 %v2717_v5  ;;  %v2634_v50 = vsel %vm2631_vm14, %v2633_v55, %v2629_v38  ;;  %v3759_v40 = vpop.eup %3758  ;;  %v2748_v15 = vmul.f32 %v3757_v35, %v2619_v7  ;;  %vm2725_vm4 = vmor %vm2723_vm0, %vm2724_vm15  ;;  %v2744_v20 = vand.u32 2147483648, %v2717_v5 }
 0x56c   :  { %v2720_v17 = vsub.f32 1.0, %v2719_v31  ;;  %v2749_v24 = vmul.f32 %v3759_v40, %v2634_v50  ;;  %v2742_v2 = vand.u32 2147483647, %v2717_v5  ;;  %vm2738_vm7 = vweird.f32 %v2717_v5 }
 0x56d   :  { %3762 = vtanh.f32 %v2748_v15  ;;  %v2745_v46 = vor.u32 1.1754944e-38, %v2744_v20 }
 0x56e   :  { %v2721_v34 = vmul.f32 %v3755_v29, %v2720_v17  ;;  %3764 = vtanh.f32 %v2749_v24  ;;  %vm2743_vm9 = vcmp.eq.f32.partialorder %v2742_v2, 8.507059e+37 }
 0x570   :  { %v2722_v57 = vadd.f32 %v3755_v29, %v2721_v34 }
 0x571   :  { %v3761_v59 = vpop.eup %3760 }
 0x572   :  { %v2734_v58 = vmul.f32 %v3761_v59, %v2717_v5  ;;  %v2726_v54 = vsel %vm2725_vm4, %v3755_v29, %v2722_v57  ;;  %vm2739_vm5 = vweird.f32 %v3761_v59 }
 0x573   :  { %v2731_v13 = vsel %vm2728_vm6, %v2730_v12, %v2726_v54  ;;  %vm2740_vm8 = vmor %vm2738_vm7, %vm2739_vm5  ;;  %v3763_v18 = vpop.eup %3762 }
 0x574   :  { %v2735_v47 = vsub.f32 1.0, %v2734_v58  ;;  %v3765_v22 = vpop.eup %3764  ;;  %v2752_v52 = vmul.f32 %v3763_v18, %v2731_v13 }
 0x576   :  { %v2736_v21 = vmul.f32 %v3761_v59, %v2735_v47 }
 0x578   :  { %v2737_v37 = vadd.f32 %v3761_v59, %v2736_v21 }
 0x57a   :  { %v2741_v10 = vsel %vm2740_vm8, %v3761_v59, %v2737_v37 }
 0x57b   :  { %v2746_v41 = vsel %vm2743_vm9, %v2745_v46, %v2741_v10 }
 0x57c   :  { %v2753_v30 = vmul.f32 %v3765_v22, %v2746_v41 }
 0x57e   :  { %v3703_v42 = vpack.i.bf16 %v2753_v30, %v2752_v52 }
 0x580   :  { %3704 = vrot.lane.b32.xlu0 %v3703_v42, %s3766_s6 }
 0x5f2   :  { %v3705_v6 = vpop.permute.xlu0 %3704 }
 0x5f3   :  { %v3707_v3 = vunpack.i.h.bf16 %v3705_v6  ;;  %v3706_v62 = vunpack.i.l.bf16 %v3705_v6 }
 0x5f5   :  { %v2763_v8 = vsel %vm812_vm2, %v4862_v45, %v3707_v3  ;;  %v2762_v32 = vsel %vm812_vm2, %v4860_v53, %v3706_v62 }
 0x5f6   :  { %v2764_v23 = vpack.c.bf16 %v2763_v8, %v2762_v32 }
 0x5f8   :  { %3584 = vmatmul.msk.bf16.vlgmr.msra.gmra.mxu1 %vm1382_vm3, %v2764_v23 }
 0x675   :  { %v2813_v44 = vpop.f32.mrf.mxu1 }
 0x676   :  { %v2814_v27 = vadd.f32 %v3717_v19, %v2813_v44 }
 0x678   :  { %2818 = vst.msk [vmem:[%s4926_s13] sm:$0xff] %vm178_vm1, %v2814_v27 }
 0x67d   :  { %v2815_v48 = vpop.f32.mrf.mxu1 }
 0x67e   :  { %v2816_v4 = vadd.f32 %v3717_v19, %v2815_v48 }
 0x680   :  { %2819 = vst.msk [vmem:[%s4926_s13 + $0x8] sm:$0xff] %vm178_vm1, %v2816_v4 }

</bundles_post_ra>
